<compile_context>
chip_gen: v7x
topology: tpu7x:2x2x1
jax: 0.10.0
libtpu: 0.0.40
codegen_flags: <defaults>
</compile_context>

<pallas_src>
import functools

import jax
import jax.numpy as jnp
from jax import lax
from jax.experimental import pallas as pl
from jax.experimental.pallas import tpu as pltpu

EPS = 1e-5


# --------------------- Conv2d 3x3 "same" + bias + per-image BN partial stats ---------------------
def _conv3x3_stats_kernel(H, W, Cin, TCO, x_ref, w_ref, b_ref, y_ref, st_ref, patch_ref):
    co = pl.program_id(1)

    # Build the im2col patch matrix once per image (it is reused across Cout tiles).
    @pl.when(co == 0)
    def _():
        x0 = x_ref[0]                                        # (H, W, Cin) bf16
        zc = jnp.zeros((H, 1, Cin), x0.dtype)
        xr = jnp.concatenate([zc, x0, zc], axis=1)           # (H, W+2, Cin)  zero halo (cols)
        zr = jnp.zeros((1, W + 2, Cin), x0.dtype)
        xp = jnp.concatenate([zr, xr, zr], axis=0)           # (H+2, W+2, Cin) zero halo (rows)
        taps = [xp[dy:dy + H, dx:dx + W, :].reshape(H * W, Cin)
                for dy in range(3) for dx in range(3)]
        patch_ref[...] = jnp.concatenate(taps, axis=-1)      # (H*W, 9*Cin)

    # Single MXU matmul, K = 9*Cin, f32 accumulation.
    acc = jnp.dot(patch_ref[...], w_ref[...], preferred_element_type=jnp.float32)
    acc = acc + b_ref[...]                                   # (H*W, TCO) + (1, TCO)
    y_ref[0] = acc.reshape(H, W, TCO)

    # Per-image, per-channel sum / sum-of-squares from the f32 accumulator (train-mode BN).
    ssum = jnp.sum(acc, axis=0, keepdims=True)               # (1, TCO)
    ssq = jnp.sum(acc * acc, axis=0, keepdims=True)          # (1, TCO)
    st_ref[0] = jnp.concatenate([ssum, ssq], axis=0)         # (2, TCO)


def conv3x3_bias_stats(x, w, b, *, tco=128):
    """x: (N,H,W,Cin) f32, w: (3,3,Cin,Cout) HWIO, b: (Cout,).
    Returns conv+bias output (N,H,W,Cout) f32 and stats (2,Cout) = [sum, sum of squares]."""
    N, H, W, Cin = x.shape
    Cout = w.shape[-1]
    TCO = tco if (Cout >= tco and Cout % tco == 0) else Cout

    xb = x.astype(jnp.bfloat16)
    wb = w.reshape(9 * Cin, Cout).astype(jnp.bfloat16)       # tap-major: (dy*3+dx)*Cin + cin
    b2 = b.reshape(1, Cout).astype(jnp.float32)

    kernel = functools.partial(_conv3x3_stats_kernel, H, W, Cin, TCO)
    y, st = pl.pallas_call(
        kernel,
        out_shape=(
            jax.ShapeDtypeStruct((N, H, W, Cout), jnp.float32),
            jax.ShapeDtypeStruct((N, 2, Cout), jnp.float32),
        ),
        grid=(N, Cout // TCO),
        in_specs=[
            pl.BlockSpec((1, H, W, Cin), lambda n, co: (n, 0, 0, 0)),
            pl.BlockSpec((9 * Cin, TCO), lambda n, co: (0, co)),
            pl.BlockSpec((1, TCO), lambda n, co: (0, co)),
        ],
        out_specs=(
            pl.BlockSpec((1, H, W, TCO), lambda n, co: (n, 0, 0, co)),
            pl.BlockSpec((1, 2, TCO), lambda n, co: (n, 0, co)),
        ),
        scratch_shapes=[pltpu.VMEM((H * W, 9 * Cin), jnp.bfloat16)],
        compiler_params=pltpu.CompilerParams(
            dimension_semantics=("parallel", "arbitrary"),   # batch axis megacore-splittable
            vmem_limit_bytes=32 * 1024 * 1024,
        ),
    )(xb, wb, b2)
    return y, jnp.sum(st, axis=0)                            # reduce per-image partials -> (2, Cout)


# ------------------------------- BatchNorm(train) affine + ReLU ----------------------------------
def _bn_relu_kernel(y_ref, s_ref, t_ref, o_ref):
    o_ref[...] = jnp.maximum(y_ref[...] * s_ref[...] + t_ref[...], 0.0)


def bn_relu(y, scale, shift, *, row_tile=256):
    """y: (N,H,W,C) f32; scale/shift: (C,). Elementwise max(y*scale+shift, 0)."""
    N, H, W, C = y.shape
    R = N * H * W
    yf = y.reshape(R, C)                                     # lane-dense, row-flattened view
    TR = min(row_tile, R)
    while TR > 8 and R % TR:
        TR -= 8
    if R % TR:
        TR = R

    out = pl.pallas_call(
        _bn_relu_kernel,
        out_shape=jax.ShapeDtypeStruct((R, C), jnp.float32),
        grid=(R // TR,),
        in_specs=[
            pl.BlockSpec((TR, C), lambda i: (i, 0)),
            pl.BlockSpec((1, C), lambda i: (0, 0)),
            pl.BlockSpec((1, C), lambda i: (0, 0)),
        ],
        out_specs=pl.BlockSpec((TR, C), lambda i: (i, 0)),
        compiler_params=pltpu.CompilerParams(dimension_semantics=("parallel",)),
    )(yf, scale.reshape(1, C).astype(jnp.float32), shift.reshape(1, C).astype(jnp.float32))
    return out.reshape(N, H, W, C)


# ------------------------------------------- LUConv2D --------------------------------------------
def lu_conv2d(x, w, b, gamma, beta):
    N, H, W, _ = x.shape
    y, st = conv3x3_bias_stats(x, w, b)
    cnt = float(N * H * W)
    mean = st[0] / cnt
    var = st[1] / cnt - mean * mean                          # biased variance (BN training mode)
    # TODO(synk): E[x^2]-E[x]^2 can cancel for |mean| >> std; switch to a two-pass centered sum
    # if tolerances ever tighten beyond ~1e-3.
    rstd = lax.rsqrt(var + EPS)
    scale = gamma * rstd
    shift = beta - mean * scale
    return bn_relu(y, scale, shift)


# -------------------------------------- pure-JAX f32 reference -----------------------------------
def reference(x, w, b, gamma, beta):
    y = lax.conv_general_dilated(x, w, (1, 1), ((1, 1), (1, 1)),
                                 dimension_numbers=("NHWC", "HWIO", "NHWC"),
                                 precision=lax.Precision.HIGHEST)
    y = y + b.reshape(1, 1, 1, -1)
    m = jnp.mean(y, axis=(0, 1, 2))
    v = jnp.var(y, axis=(0, 1, 2))
    return jnp.maximum((y - m) * (gamma / jnp.sqrt(v + EPS)) + beta, 0.0)


if __name__ == "__main__":
    in_channel, out_channel = 16, 128
    N, H, W = 2, 16, 16

    key = jax.random.PRNGKey(0)
    kx, kw, kb, kg, ke = jax.random.split(key, 5)
    x = jax.random.normal(kx, (N, H, W, in_channel), jnp.float32)                  # NHWC
    w = jax.random.normal(kw, (3, 3, in_channel, out_channel), jnp.float32) * 0.1  # HWIO
    b = jax.random.normal(kb, (out_channel,), jnp.float32) * 0.1
    gamma = 1.0 + 0.1 * jax.random.normal(kg, (out_channel,), jnp.float32)
    beta = 0.1 * jax.random.normal(ke, (out_channel,), jnp.float32)

    out = jax.jit(lu_conv2d)(x, w, b, gamma, beta)
    out = jax.block_until_ready(out)
    assert out.shape == (N, H, W, out_channel), out.shape

    ref = reference(x, w, b, gamma, beta)
    err = float(jnp.max(jnp.abs(out - ref)))
    assert jnp.allclose(out, ref, atol=2e-2, rtol=2e-2), f"max abs err {err}"
    print("KERNEL_OK")
</pallas_src>

<mosaic_0001>
module attributes {stable_mosaic.version = 11 : i64} {
  func.func @_conv3x3_stats_kernel(%arg0: i32, %arg1: i32, %arg2: memref<1x16x16x16xbf16, #tpu.memory_space<vmem>>, %arg3: memref<144x128xbf16, #tpu.memory_space<vmem>>, %arg4: memref<1x128xf32, #tpu.memory_space<vmem>>, %arg5: memref<1x16x16x128xf32, #tpu.memory_space<vmem>>, %arg6: memref<1x2x128xf32, #tpu.memory_space<vmem>>, %arg7: memref<256x144xbf16, #tpu.memory_space<vmem>>) attributes {dimension_semantics = [#tpu.dimension_semantics<parallel>, #tpu.dimension_semantics<arbitrary>], iteration_bounds = array<i64: 2, 1>, scalar_prefetch = 0 : i64, scratch_operands = 1 : i64, tpu.core_type = #tpu.core_type<tc>, window_params = [{transform_indices = @transform_0, window_bounds = array<i64: 1, 16, 16, 16>}, {transform_indices = @transform_1, window_bounds = array<i64: 144, 128>}, {transform_indices = @transform_2, window_bounds = array<i64: 1, 128>}, {transform_indices = @transform_3, window_bounds = array<i64: 1, 16, 16, 128>}, {transform_indices = @transform_4, window_bounds = array<i64: 1, 2, 128>}]} {
    %c0_i32 = arith.constant 0 : i32
    %0 = arith.cmpi eq, %arg1, %c0_i32 : i32
    %1 = arith.extui %0 : i1 to i32
    %c0_i32_0 = arith.constant 0 : i32
    %2 = arith.cmpi ne, %1, %c0_i32_0 : i32
    scf.if %2 {
      %c0_15 = arith.constant 0 : index
      %c0_16 = arith.constant 0 : index
      %c0_17 = arith.constant 0 : index
      %c0_18 = arith.constant 0 : index
      %22 = vector.load %arg2[%c0_15, %c0_16, %c0_17, %c0_18] : memref<1x16x16x16xbf16, #tpu.memory_space<vmem>>, vector<1x16x16x16xbf16>
      %23 = vector.shape_cast %22 : vector<1x16x16x16xbf16> to vector<16x16x16xbf16>
      %cst_19 = arith.constant 0.000000e+00 : bf16
      %24 = vector.broadcast %cst_19 : bf16 to vector<16x1x16xbf16>
      %25 = tpu.concatenate %24, %23, %24 in 1 : vector<16x1x16xbf16>, vector<16x16x16xbf16>, vector<16x1x16xbf16> -> vector<16x18x16xbf16>
      %cst_20 = arith.constant 0.000000e+00 : bf16
      %26 = vector.broadcast %cst_20 : bf16 to vector<1x18x16xbf16>
      %27 = tpu.concatenate %26, %25, %26 in 0 : vector<1x18x16xbf16>, vector<16x18x16xbf16>, vector<1x18x16xbf16> -> vector<18x18x16xbf16>
      %28 = vector.extract_strided_slice %27 {offsets = [0, 0, 0], sizes = [16, 16, 16], strides = [1, 1, 1]} : vector<18x18x16xbf16> to vector<16x16x16xbf16>
      %29 = vector.shape_cast %28 : vector<16x16x16xbf16> to vector<256x16xbf16>
      %30 = vector.extract_strided_slice %27 {offsets = [0, 1, 0], sizes = [16, 16, 16], strides = [1, 1, 1]} : vector<18x18x16xbf16> to vector<16x16x16xbf16>
      %31 = vector.shape_cast %30 : vector<16x16x16xbf16> to vector<256x16xbf16>
      %32 = vector.extract_strided_slice %27 {offsets = [0, 2, 0], sizes = [16, 16, 16], strides = [1, 1, 1]} : vector<18x18x16xbf16> to vector<16x16x16xbf16>
      %33 = vector.shape_cast %32 : vector<16x16x16xbf16> to vector<256x16xbf16>
      %34 = vector.extract_strided_slice %27 {offsets = [1, 0, 0], sizes = [16, 16, 16], strides = [1, 1, 1]} : vector<18x18x16xbf16> to vector<16x16x16xbf16>
      %35 = vector.shape_cast %34 : vector<16x16x16xbf16> to vector<256x16xbf16>
      %36 = vector.extract_strided_slice %27 {offsets = [1, 1, 0], sizes = [16, 16, 16], strides = [1, 1, 1]} : vector<18x18x16xbf16> to vector<16x16x16xbf16>
      %37 = vector.shape_cast %36 : vector<16x16x16xbf16> to vector<256x16xbf16>
      %38 = vector.extract_strided_slice %27 {offsets = [1, 2, 0], sizes = [16, 16, 16], strides = [1, 1, 1]} : vector<18x18x16xbf16> to vector<16x16x16xbf16>
      %39 = vector.shape_cast %38 : vector<16x16x16xbf16> to vector<256x16xbf16>
      %40 = vector.extract_strided_slice %27 {offsets = [2, 0, 0], sizes = [16, 16, 16], strides = [1, 1, 1]} : vector<18x18x16xbf16> to vector<16x16x16xbf16>
      %41 = vector.shape_cast %40 : vector<16x16x16xbf16> to vector<256x16xbf16>
      %42 = vector.extract_strided_slice %27 {offsets = [2, 1, 0], sizes = [16, 16, 16], strides = [1, 1, 1]} : vector<18x18x16xbf16> to vector<16x16x16xbf16>
      %43 = vector.shape_cast %42 : vector<16x16x16xbf16> to vector<256x16xbf16>
      %44 = vector.extract_strided_slice %27 {offsets = [2, 2, 0], sizes = [16, 16, 16], strides = [1, 1, 1]} : vector<18x18x16xbf16> to vector<16x16x16xbf16>
      %45 = vector.shape_cast %44 : vector<16x16x16xbf16> to vector<256x16xbf16>
      %46 = tpu.concatenate %29, %31, %33, %35, %37, %39, %41, %43, %45 in 1 : vector<256x16xbf16>, vector<256x16xbf16>, vector<256x16xbf16>, vector<256x16xbf16>, vector<256x16xbf16>, vector<256x16xbf16>, vector<256x16xbf16>, vector<256x16xbf16>, vector<256x16xbf16> -> vector<256x144xbf16>
      %c0_21 = arith.constant 0 : index
      %c0_22 = arith.constant 0 : index
      %47 = vector.load %arg7[%c0_21, %c0_22] : memref<256x144xbf16, #tpu.memory_space<vmem>>, vector<256x144xbf16>
      tpu.vector_store %arg7[%c0_21, %c0_22], %46 {strides = array<i32>} : memref<256x144xbf16, #tpu.memory_space<vmem>>, vector<256x144xbf16>,
    } else {
    }
    %c0 = arith.constant 0 : index
    %c0_1 = arith.constant 0 : index
    %3 = vector.load %arg7[%c0, %c0_1] : memref<256x144xbf16, #tpu.memory_space<vmem>>, vector<256x144xbf16>
    %c0_2 = arith.constant 0 : index
    %c0_3 = arith.constant 0 : index
    %4 = vector.load %arg3[%c0_2, %c0_3] : memref<144x128xbf16, #tpu.memory_space<vmem>>, vector<144x128xbf16>
    %cst = arith.constant dense<0.000000e+00> : vector<256x128xf32>
    %5 = tpu.matmul %3, %4, %cst {dimension_numbers = #tpu.dot_dimension_numbers<[1], [0], [0], [1], [0, 0, 1, 1], [], []>} : vector<256x144xbf16>, vector<144x128xbf16>, vector<256x128xf32> -> vector<256x128xf32>
    %c0_4 = arith.constant 0 : index
    %c0_5 = arith.constant 0 : index
    %6 = vector.load %arg4[%c0_4, %c0_5] : memref<1x128xf32, #tpu.memory_space<vmem>>, vector<1x128xf32>
    %7 = vector.broadcast %6 : vector<1x128xf32> to vector<256x128xf32>
    %8 = arith.addf %5, %7 : vector<256x128xf32>
    %9 = vector.shape_cast %8 : vector<256x128xf32> to vector<16x16x128xf32>
    %c0_6 = arith.constant 0 : index
    %c0_7 = arith.constant 0 : index
    %c0_8 = arith.constant 0 : index
    %c0_9 = arith.constant 0 : index
    %10 = vector.load %arg5[%c0_6, %c0_7, %c0_8, %c0_9] : memref<1x16x16x128xf32, #tpu.memory_space<vmem>>, vector<1x16x16x128xf32>
    %11 = vector.shape_cast %10 : vector<1x16x16x128xf32> to vector<16x16x128xf32>
    %12 = vector.shape_cast %9 : vector<16x16x128xf32> to vector<1x16x16x128xf32>
    tpu.vector_store %arg5[%c0_6, %c0_7, %c0_8, %c0_9], %12 {strides = array<i32>} : memref<1x16x16x128xf32, #tpu.memory_space<vmem>>, vector<1x16x16x128xf32>,
    %cst_10 = arith.constant dense<0.000000e+00> : vector<128xf32>
    %13 = vector.multi_reduction <add>, %8, %cst_10 [0] : vector<256x128xf32> to vector<128xf32>
    %14 = vector.shape_cast %13 : vector<128xf32> to vector<1x128xf32>
    %15 = arith.mulf %8, %8 : vector<256x128xf32>
    %cst_11 = arith.constant dense<0.000000e+00> : vector<128xf32>
    %16 = vector.multi_reduction <add>, %15, %cst_11 [0] : vector<256x128xf32> to vector<128xf32>
    %17 = vector.shape_cast %16 : vector<128xf32> to vector<1x128xf32>
    %18 = tpu.concatenate %14, %17 in 0 : vector<1x128xf32>, vector<1x128xf32> -> vector<2x128xf32>
    %c0_12 = arith.constant 0 : index
    %c0_13 = arith.constant 0 : index
    %c0_14 = arith.constant 0 : index
    %19 = vector.load %arg6[%c0_12, %c0_13, %c0_14] : memref<1x2x128xf32, #tpu.memory_space<vmem>>, vector<1x2x128xf32>
    %20 = vector.shape_cast %19 : vector<1x2x128xf32> to vector<2x128xf32>
    %21 = vector.shape_cast %18 : vector<2x128xf32> to vector<1x2x128xf32>
    tpu.vector_store %arg6[%c0_12, %c0_13, %c0_14], %21 {strides = array<i32>} : memref<1x2x128xf32, #tpu.memory_space<vmem>>, vector<1x2x128xf32>,
    return
  }
  func.func @transform_0(%arg0: i32, %arg1: i32) -> (i32, i32, i32, i32) {
    %c0_i32 = arith.constant 0 : i32
    %c0_i32_0 = arith.constant 0 : i32
    %c0_i32_1 = arith.constant 0 : i32
    %c0_i32_2 = arith.constant 0 : i32
    return %arg0, %c0_i32, %c0_i32_0, %c0_i32_1 : i32, i32, i32, i32
  }
  func.func @transform_1(%arg0: i32, %arg1: i32) -> (i32, i32) {
    %c0_i32 = arith.constant 0 : i32
    %c0_i32_0 = arith.constant 0 : i32
    return %c0_i32, %arg1 : i32, i32
  }
  func.func @transform_2(%arg0: i32, %arg1: i32) -> (i32, i32) {
    %c0_i32 = arith.constant 0 : i32
    %c0_i32_0 = arith.constant 0 : i32
    return %c0_i32, %arg1 : i32, i32
  }
  func.func @transform_3(%arg0: i32, %arg1: i32) -> (i32, i32, i32, i32) {
    %c0_i32 = arith.constant 0 : i32
    %c0_i32_0 = arith.constant 0 : i32
    %c0_i32_1 = arith.constant 0 : i32
    return %arg0, %c0_i32, %c0_i32_0, %arg1 : i32, i32, i32, i32
  }
  func.func @transform_4(%arg0: i32, %arg1: i32) -> (i32, i32, i32) {
    %c0_i32 = arith.constant 0 : i32
    %c0_i32_0 = arith.constant 0 : i32
    return %arg0, %c0_i32, %arg1 : i32, i32, i32
  }
}

module attributes {stable_mosaic.version = 11 : i64} {
  func.func @_bn_relu_kernel(%arg0: i32, %arg1: memref<256x128xf32, #tpu.memory_space<vmem>>, %arg2: memref<1x128xf32, #tpu.memory_space<vmem>>, %arg3: memref<1x128xf32, #tpu.memory_space<vmem>>, %arg4: memref<256x128xf32, #tpu.memory_space<vmem>>) attributes {dimension_semantics = [#tpu.dimension_semantics<parallel>], iteration_bounds = array<i64: 2>, scalar_prefetch = 0 : i64, scratch_operands = 0 : i64, tpu.core_type = #tpu.core_type<tc>, window_params = [{transform_indices = @transform_0, window_bounds = array<i64: 256, 128>}, {pipeline_mode = #tpu.pipeline_mode<synchronous>, transform_indices = @transform_1, window_bounds = array<i64: 1, 128>}, {pipeline_mode = #tpu.pipeline_mode<synchronous>, transform_indices = @transform_2, window_bounds = array<i64: 1, 128>}, {transform_indices = @transform_3, window_bounds = array<i64: 256, 128>}]} {
    %c0 = arith.constant 0 : index
    %c0_0 = arith.constant 0 : index
    %0 = vector.load %arg1[%c0, %c0_0] : memref<256x128xf32, #tpu.memory_space<vmem>>, vector<256x128xf32>
    %c0_1 = arith.constant 0 : index
    %c0_2 = arith.constant 0 : index
    %1 = vector.load %arg2[%c0_1, %c0_2] : memref<1x128xf32, #tpu.memory_space<vmem>>, vector<1x128xf32>
    %2 = vector.broadcast %1 : vector<1x128xf32> to vector<256x128xf32>
    %3 = arith.mulf %0, %2 : vector<256x128xf32>
    %c0_3 = arith.constant 0 : index
    %c0_4 = arith.constant 0 : index
    %4 = vector.load %arg3[%c0_3, %c0_4] : memref<1x128xf32, #tpu.memory_space<vmem>>, vector<1x128xf32>
    %5 = vector.broadcast %4 : vector<1x128xf32> to vector<256x128xf32>
    %6 = arith.addf %3, %5 : vector<256x128xf32>
    %cst = arith.constant 0.000000e+00 : f32
    %7 = vector.broadcast %cst : f32 to vector<256x128xf32>
    %8 = arith.maximumf %6, %7 : vector<256x128xf32>
    %c0_5 = arith.constant 0 : index
    %c0_6 = arith.constant 0 : index
    %9 = vector.load %arg4[%c0_5, %c0_6] : memref<256x128xf32, #tpu.memory_space<vmem>>, vector<256x128xf32>
    tpu.vector_store %arg4[%c0_5, %c0_6], %8 {strides = array<i32>} : memref<256x128xf32, #tpu.memory_space<vmem>>, vector<256x128xf32>,
    return
  }
  func.func @transform_0(%arg0: i32) -> (i32, i32) {
    %c0_i32 = arith.constant 0 : i32
    %c0_i32_0 = arith.constant 0 : i32
    return %arg0, %c0_i32 : i32, i32
  }
  func.func @transform_1(%arg0: i32) -> (i32, i32) {
    %c0_i32 = arith.constant 0 : i32
    %c0_i32_0 = arith.constant 0 : i32
    %c0_i32_1 = arith.constant 0 : i32
    return %c0_i32, %c0_i32_0 : i32, i32
  }
  func.func @transform_2(%arg0: i32) -> (i32, i32) {
    %c0_i32 = arith.constant 0 : i32
    %c0_i32_0 = arith.constant 0 : i32
    %c0_i32_1 = arith.constant 0 : i32
    return %c0_i32, %c0_i32_0 : i32, i32
  }
  func.func @transform_3(%arg0: i32) -> (i32, i32) {
    %c0_i32 = arith.constant 0 : i32
    %c0_i32_0 = arith.constant 0 : i32
    return %arg0, %c0_i32 : i32, i32
  }
}

</mosaic_0001>

<bundles_post_ra>
// kernel: lu_conv2d.3
= control target key start
LH: loop header
LB: loop body
LE: loop exit
PB: predicated region body
PF: predicated region fallthrough
CT: control target
= control target key end

     0   :  { %8 = vsyncpa [#allocation3], 0  ;;  %s817_s0 = inlined_call_operand.vmem [shape: f32[512,128], index: 0, kind: input, shape index: {}]   ;;  %s818_s1 = inlined_call_operand.vmem [shape: f32[1,128], index: 1, kind: input, shape index: {}]   ;;  %s819_s2 = inlined_call_operand.vmem [shape: f32[1,128], index: 2, kind: input, shape index: {}]   ;;  %s820_s3 = inlined_call_operand.hbm [shape: f32[512,128], index: 3, kind: output, shape index: {}]  }
   0x1   :  { %10 = vsyncpa [#allocation3 + $0x1], 0  ;;  %s565_s12 = smov 0   ;;  %s567_s13 = smov 0  }
   0x2   :  { %s569_s14 = smov 0   ;;  %s571_s15 = smov 0  }
   0x3 LB: > { %s586_s16 = sadd.s32 4294967295, %s540_s15   ;;  %s422_s17 = sadd.s32 4294967294, %s540_s15   ;;  %s540_s15 = sphi %s571_s15, %s826_s15   ;;  %s536_s14 = sphi %s569_s14, %s825_s14   ;;  %s532_s13 = sphi %s567_s13, %s824_s13   ;;  %s528_s12 = sphi %s565_s12, %s823_s12  }
   0x4   : > { %s590_s18 = sadd.s32 1, %s540_s15   ;;  %s91_s19 = sadd.s32 1, %s536_s14 }
   0x5   : > { %s88_s20 = ssub.s32 %s540_s15, %s590_s18  ;;  %p101_p0 = scmp.ne.s32.totalorder %s536_s14, %s532_s13 }
   0x6   : > { %p89_p1 = scmp.eq.s32.totalorder %s88_s20, 0  ;;  %p102_p2 = scmp.eq.s32.totalorder %s586_s16, 1 }
   0x7   : > { %p107_p3 = scmp.ne.s32.totalorder %s532_s13, %s528_s12  ;;  %p108_p4 = scmp.eq.s32.totalorder %s422_s17, 1 }
   0x8   : > { %s601_s21 = scalar_select %p89_p1, %s536_s14, %s91_s19  }
   0x9   : > { %p603_p5 = por %p102_p2, %p101_p0  ;;  %p607_p6 = por %p108_p4, %p107_p3 }
   0xa   : > { %p425_p7 = scmp.ge.s32.totalorder %s540_s15, 1  ;;  %p141_p8 = scmp.lt.s32.totalorder %s540_s15, 3 }
   0xc   : > { %p142_p9 = pnand %p425_p7, %p141_p8 }
   0xd   : > { %s427_s24 = sshll.u32 (!%p142_p9), %s586_s16, 5  ;;  %s162_s25 = sand.u32 (!%p142_p9), 1, %s532_s13   ;;  %v618_v0 = vld [vmem:[%s818_s1] ss:$0 sm:$0xff] (!%p142_p9) }
   0xe   : > { %145 = sbr.rel (%p142_p9) target bundleno = 68 (0x44), region = 32  ;;  %p166_p10 = scmp.lt.s32.totalorder (!%p142_p9), %s427_s24, 63  ;;  %v628_v1 = vld [vmem:[%s819_s2] ss:$0 sm:$0xff] (!%p142_p9) }
   0xf   : > { %s635_s7 = sshll.u32 (!%p142_p9), %s162_s25, 8  ;;  %s436_s9 = sshll.u32 (!%p142_p9), %s586_s16, 12 }
  0x10   : > { %s666_s8 = scalar_lea.vmem (!%p142_p9), [#allocation2], %s635_s7  ;;  %s765_s17 = scalar_lea.hbm (!%p142_p9), %s820_s3, %s436_s9 }
  0x11   : > { %s360_s10 = sshll.u32 (!%p142_p9), %s666_s8, 4  ;;  %s776_s19 = scalar_lea.sflag (!%p142_p9), [#allocation3], %s162_s25  ;;  %s767_s10 = int_to_ptr.vmem [resolvable:$true] %s360_s10 }
  0x12   : > { %s478_s20 = scalar_lea.vmem (!%p142_p9), %s767_s10, 4096 }
  0x13   : > { %p479_p11 = scmp.ne.s32.totalorder (!%p142_p9), %s767_s10, %s478_s20 }
  0x15   : > { %s828_s24 = smov (!%p166_p10, %s427_s24), 63  ;;  %p480_p12 = pnand %p479_p11, %p603_p5 }
  0x16   : > { %s428_s26 = sshll.u32 %s828_s24, 3  ;;  %s542_s24 = smov [#allocation2]  }
  0x17   : > { %s623_s4 = scalar_lea.vmem %s817_s0, %s428_s26  ;;  %p481_p13 = pneg %p480_p12 }
  0x18   : > { %v172_v2 = vld [vmem:[%s623_s4] sm:$0xff]  ;;  %v173_v3 = vld [vmem:[%s623_s4 + $0x8] sm:$0xff]  ;;  %v174_v4 = vld [vmem:[%s623_s4 + $0x10] sm:$0xff]  ;;  %s482_s26 = sshll.u32 %s542_s24, 4  ;;  %s483_s26 = int_to_ptr.vmem [resolvable:$false] %s482_s26 }
  0x19   : > { %v211_v5 = vmul.f32 %v618_v0, %v172_v2  ;;  %v212_v6 = vmul.f32 %v618_v0, %v173_v3  ;;  %v213_v7 = vmul.f32 %v618_v0, %v174_v4  ;;  %v175_v8 = vld [vmem:[%s623_s4 + $0x18] sm:$0xff]  ;;  %v176_v9 = vld [vmem:[%s623_s4 + $0x20] sm:$0xff]  ;;  %v177_v10 = vld [vmem:[%s623_s4 + $0x28] sm:$0xff]  ;;  %s484_s27 = scalar_lea.vmem %s483_s26, 8192  ;;  %p485_p0 = scmp.lt.s32.totalorder %s767_s10, %s483_s26 }
  0x1a   : > { %v214_v11 = vmul.f32 %v618_v0, %v175_v8  ;;  %v215_v12 = vmul.f32 %v618_v0, %v176_v9  ;;  %v216_v13 = vmul.f32 %v618_v0, %v177_v10  ;;  %v178_v14 = vld [vmem:[%s623_s4 + $0x30] sm:$0xff]  ;;  %v179_v15 = vld [vmem:[%s623_s4 + $0x38] sm:$0xff]  ;;  %v180_v24 = vld [vmem:[%s623_s4 + $0x40] sm:$0xff]  ;;  %p486_p1 = scmp.lt.s32.totalorder %s484_s27, %s478_s20 }
  0x1b   : > { %v250_v16 = vadd.f32 %v628_v1, %v211_v5  ;;  %v251_v17 = vadd.f32 %v628_v1, %v212_v6  ;;  %v252_v18 = vadd.f32 %v628_v1, %v213_v7  ;;  %v217_v19 = vmul.f32 %v618_v0, %v178_v14  ;;  %v181_v25 = vld [vmem:[%s623_s4 + $0x48] sm:$0xff]  ;;  %v182_v26 = vld [vmem:[%s623_s4 + $0x50] sm:$0xff]  ;;  %v183_v31 = vld [vmem:[%s623_s4 + $0x58] sm:$0xff] }
  0x1c   : > { %v253_v20 = vadd.f32 %v628_v1, %v214_v11  ;;  %v254_v21 = vadd.f32 %v628_v1, %v215_v12  ;;  %v255_v22 = vadd.f32 %v628_v1, %v216_v13  ;;  %v218_v23 = vmul.f32 %v618_v0, %v179_v15  ;;  %v184_v32 = vld [vmem:[%s623_s4 + $0x60] sm:$0xff]  ;;  %v185_v33 = vld [vmem:[%s623_s4 + $0x68] sm:$0xff]  ;;  %v186_v38 = vld [vmem:[%s623_s4 + $0x70] sm:$0xff]  ;;  %p487_p2 = por %p486_p1, %p485_p0 }
  0x1d   : > { %v282_v27 = vmax.f32 %v250_v16, 0.0  ;;  %v283_v28 = vmax.f32 %v251_v17, 0.0  ;;  %v284_v29 = vmax.f32 %v252_v18, 0.0  ;;  %v256_v30 = vadd.f32 %v628_v1, %v217_v19  ;;  %v187_v43 = vld [vmem:[%s623_s4 + $0x78] sm:$0xff]  ;;  %v188_v56 = vld [vmem:[%s623_s4 + $0x80] sm:$0xff]  ;;  %v189_v57 = vld [vmem:[%s623_s4 + $0x88] sm:$0xff] }
  0x1e   : > { %v285_v34 = vmax.f32 %v253_v20, 0.0  ;;  %v286_v35 = vmax.f32 %v254_v21, 0.0  ;;  %v287_v36 = vmax.f32 %v255_v22, 0.0  ;;  %v257_v37 = vadd.f32 %v628_v1, %v218_v23  ;;  %v190_v58 = vld [vmem:[%s623_s4 + $0x90] sm:$0xff]  ;;  %v191_v63 = vld [vmem:[%s623_s4 + $0x98] sm:$0xff]  ;;  %v192_v2 = vld [vmem:[%s623_s4 + $0xa0] sm:$0xff]  ;;  %p488_p3 = pnand %p487_p2, %p481_p13 }
  0x1f   : > { %314 = vst [vmem:[%s666_s8] sm:$0xff] %v282_v27  ;;  %315 = vst [vmem:[%s666_s8 + $0x8] sm:$0xff] %v283_v28  ;;  %v288_v39 = vmax.f32 %v256_v30, 0.0  ;;  %v219_v40 = vmul.f32 %v618_v0, %v180_v24  ;;  %v220_v41 = vmul.f32 %v618_v0, %v181_v25  ;;  %v221_v42 = vmul.f32 %v618_v0, %v182_v26  ;;  %v193_v3 = vld [vmem:[%s623_s4 + $0xa8] sm:$0xff]  ;;  %v194_v8 = vld [vmem:[%s623_s4 + $0xb0] sm:$0xff] }
  0x20   : > { %316 = vst [vmem:[%s666_s8 + $0x10] sm:$0xff] %v284_v29  ;;  %317 = vst [vmem:[%s666_s8 + $0x18] sm:$0xff] %v285_v34  ;;  %v289_v44 = vmax.f32 %v257_v37, 0.0  ;;  %v222_v45 = vmul.f32 %v618_v0, %v183_v31  ;;  %v223_v46 = vmul.f32 %v618_v0, %v184_v32  ;;  %v224_v47 = vmul.f32 %v618_v0, %v185_v33  ;;  %v195_v13 = vld [vmem:[%s623_s4 + $0xb8] sm:$0xff]  ;;  %v196_v26 = vld [vmem:[%s623_s4 + $0xc0] sm:$0xff] }
  0x21   : > { %318 = vst [vmem:[%s666_s8 + $0x20] sm:$0xff] %v286_v35  ;;  %319 = vst [vmem:[%s666_s8 + $0x28] sm:$0xff] %v287_v36  ;;  %v258_v48 = vadd.f32 %v628_v1, %v219_v40  ;;  %v259_v49 = vadd.f32 %v628_v1, %v220_v41  ;;  %v260_v50 = vadd.f32 %v628_v1, %v221_v42  ;;  %v197_v27 = vld [vmem:[%s623_s4 + $0xc8] sm:$0xff]  ;;  %v198_v28 = vld [vmem:[%s623_s4 + $0xd0] sm:$0xff] }
  0x22   : > { %320 = vst [vmem:[%s666_s8 + $0x30] sm:$0xff] %v288_v39  ;;  %v225_v51 = vmul.f32 %v618_v0, %v186_v38  ;;  %321 = vst [vmem:[%s666_s8 + $0x38] sm:$0xff] %v289_v44  ;;  %v261_v52 = vadd.f32 %v628_v1, %v222_v45  ;;  %v262_v53 = vadd.f32 %v628_v1, %v223_v46  ;;  %v199_v33 = vld [vmem:[%s623_s4 + $0xd8] sm:$0xff]  ;;  %v200_v34 = vld [vmem:[%s623_s4 + $0xe0] sm:$0xff] }
  0x23   : > { %v263_v54 = vadd.f32 %v628_v1, %v224_v47  ;;  %v226_v55 = vmul.f32 %v618_v0, %v187_v43  ;;  %v290_v59 = vmax.f32 %v258_v48, 0.0  ;;  %v291_v60 = vmax.f32 %v259_v49, 0.0  ;;  %v201_v35 = vld [vmem:[%s623_s4 + $0xe8] sm:$0xff]  ;;  %v202_v40 = vld [vmem:[%s623_s4 + $0xf0] sm:$0xff]  ;;  %v203_v45 = vld [vmem:[%s623_s4 + $0xf8] sm:$0xff] }
  0x24   : > { %v292_v61 = vmax.f32 %v260_v50, 0.0  ;;  %v264_v62 = vadd.f32 %v628_v1, %v225_v51  ;;  %v293_v4 = vmax.f32 %v261_v52, 0.0  ;;  %v294_v5 = vmax.f32 %v262_v53, 0.0 }
  0x25   : > { %v295_v6 = vmax.f32 %v263_v54, 0.0  ;;  %v265_v7 = vadd.f32 %v628_v1, %v226_v55  ;;  %322 = vst [vmem:[%s666_s8 + $0x40] sm:$0xff] %v290_v59  ;;  %323 = vst [vmem:[%s666_s8 + $0x48] sm:$0xff] %v291_v60  ;;  %v227_v10 = vmul.f32 %v618_v0, %v188_v56  ;;  %v228_v11 = vmul.f32 %v618_v0, %v189_v57 }
  0x26   : > { %324 = vst [vmem:[%s666_s8 + $0x50] sm:$0xff] %v292_v61  ;;  %v296_v9 = vmax.f32 %v264_v62, 0.0  ;;  %v229_v12 = vmul.f32 %v618_v0, %v190_v58  ;;  %325 = vst [vmem:[%s666_s8 + $0x58] sm:$0xff] %v293_v4  ;;  %v230_v15 = vmul.f32 %v618_v0, %v191_v63  ;;  %v231_v16 = vmul.f32 %v618_v0, %v192_v2 }
  0x27   : > { %326 = vst [vmem:[%s666_s8 + $0x60] sm:$0xff] %v294_v5  ;;  %327 = vst [vmem:[%s666_s8 + $0x68] sm:$0xff] %v295_v6  ;;  %v297_v14 = vmax.f32 %v265_v7, 0.0  ;;  %v232_v17 = vmul.f32 %v618_v0, %v193_v3  ;;  %v266_v18 = vadd.f32 %v628_v1, %v227_v10  ;;  %v267_v19 = vadd.f32 %v628_v1, %v228_v11 }
  0x28   : > { %328 = vst [vmem:[%s666_s8 + $0x70] sm:$0xff] %v296_v9  ;;  %v268_v20 = vadd.f32 %v628_v1, %v229_v12  ;;  %v233_v21 = vmul.f32 %v618_v0, %v194_v8  ;;  %v269_v22 = vadd.f32 %v628_v1, %v230_v15  ;;  %v270_v23 = vadd.f32 %v628_v1, %v231_v16 }
  0x29   : > { %329 = vst [vmem:[%s666_s8 + $0x78] sm:$0xff] %v297_v14  ;;  %v271_v24 = vadd.f32 %v628_v1, %v232_v17  ;;  %v234_v25 = vmul.f32 %v618_v0, %v195_v13  ;;  %v298_v29 = vmax.f32 %v266_v18, 0.0  ;;  %v299_v30 = vmax.f32 %v267_v19, 0.0 }
  0x2a   : > { %v300_v31 = vmax.f32 %v268_v20, 0.0  ;;  %v272_v32 = vadd.f32 %v628_v1, %v233_v21  ;;  %v301_v36 = vmax.f32 %v269_v22, 0.0  ;;  %v302_v37 = vmax.f32 %v270_v23, 0.0 }
  0x2b   : > { %v303_v38 = vmax.f32 %v271_v24, 0.0  ;;  %v273_v39 = vadd.f32 %v628_v1, %v234_v25  ;;  %330 = vst [vmem:[%s666_s8 + $0x80] sm:$0xff] %v298_v29  ;;  %331 = vst [vmem:[%s666_s8 + $0x88] sm:$0xff] %v299_v30  ;;  %v235_v42 = vmul.f32 %v618_v0, %v196_v26  ;;  %v236_v43 = vmul.f32 %v618_v0, %v197_v27 }
  0x2c   : > { %332 = vst [vmem:[%s666_s8 + $0x90] sm:$0xff] %v300_v31  ;;  %v304_v41 = vmax.f32 %v272_v32, 0.0  ;;  %v237_v44 = vmul.f32 %v618_v0, %v198_v28  ;;  %333 = vst [vmem:[%s666_s8 + $0x98] sm:$0xff] %v301_v36  ;;  %v238_v47 = vmul.f32 %v618_v0, %v199_v33  ;;  %v239_v48 = vmul.f32 %v618_v0, %v200_v34 }
  0x2d   : > { %334 = vst [vmem:[%s666_s8 + $0xa0] sm:$0xff] %v302_v37  ;;  %335 = vst [vmem:[%s666_s8 + $0xa8] sm:$0xff] %v303_v38  ;;  %v305_v46 = vmax.f32 %v273_v39, 0.0  ;;  %v240_v49 = vmul.f32 %v618_v0, %v201_v35  ;;  %v274_v50 = vadd.f32 %v628_v1, %v235_v42  ;;  %v275_v51 = vadd.f32 %v628_v1, %v236_v43 }
  0x2e   : > { %336 = vst [vmem:[%s666_s8 + $0xb0] sm:$0xff] %v304_v41  ;;  %v276_v52 = vadd.f32 %v628_v1, %v237_v44  ;;  %v241_v53 = vmul.f32 %v618_v0, %v202_v40  ;;  %v277_v54 = vadd.f32 %v628_v1, %v238_v47  ;;  %v278_v55 = vadd.f32 %v628_v1, %v239_v48 }
  0x2f   : > { %337 = vst [vmem:[%s666_s8 + $0xb8] sm:$0xff] %v305_v46  ;;  %v279_v56 = vadd.f32 %v628_v1, %v240_v49  ;;  %v242_v57 = vmul.f32 %v618_v0, %v203_v45  ;;  %v306_v58 = vmax.f32 %v274_v50, 0.0  ;;  %v307_v59 = vmax.f32 %v275_v51, 0.0 }
  0x30   : > { %v308_v60 = vmax.f32 %v276_v52, 0.0  ;;  %v280_v61 = vadd.f32 %v628_v1, %v241_v53  ;;  %v309_v62 = vmax.f32 %v277_v54, 0.0  ;;  %v310_v63 = vmax.f32 %v278_v55, 0.0 }
  0x31   : > { %v311_v2 = vmax.f32 %v279_v56, 0.0  ;;  %v281_v3 = vadd.f32 %v628_v1, %v242_v57  ;;  %338 = vst [vmem:[%s666_s8 + $0xc0] sm:$0xff] %v306_v58  ;;  %339 = vst [vmem:[%s666_s8 + $0xc8] sm:$0xff] %v307_v59 }
  0x32   : > { %340 = vst [vmem:[%s666_s8 + $0xd0] sm:$0xff] %v308_v60  ;;  %v312_v0 = vmax.f32 %v280_v61, 0.0  ;;  %341 = vst [vmem:[%s666_s8 + $0xd8] sm:$0xff] %v309_v62 }
  0x33   : > { %342 = vst [vmem:[%s666_s8 + $0xe0] sm:$0xff] %v310_v63  ;;  %343 = vst [vmem:[%s666_s8 + $0xe8] sm:$0xff] %v311_v2  ;;  %v313_v4 = vmax.f32 %v281_v3, 0.0 }
  0x34   : > { %344 = vst [vmem:[%s666_s8 + $0xf0] sm:$0xff] %v312_v0 }
  0x35   : > { %345 = vst [vmem:[%s666_s8 + $0xf8] sm:$0xff] %v313_v4 }
  0x36   : > { %491 = shalt.err (!%p488_p3)
}
  0x37   : > { %s492_s25 = scalar_lea.hbm %s765_s17, 4096  ;;  %s496_s30 = scalar_lea.hbm %s820_s3, 8192 }
  0x38   : > { %p493_p4 = scmp.ne.s32.totalorder %s765_s17, %s492_s25  ;;  %p497_p9 = scmp.lt.u32.totalorder %s765_s17, %s820_s3 }
  0x39   : > { %p498_p10 = scmp.lt.u32.totalorder %s496_s30, %s492_s25  ;;  %p500_p12 = scmp.lt.u32.totalorder %s492_s25, %s765_s17 }
  0x3a   : > { %p494_p7 = pnand %p493_p4, %p603_p5 }
  0x3b   : > { %p499_p11 = por %p498_p10, %p497_p9 }
  0x3c   : > { %p495_p8 = pneg %p494_p7 }
  0x3d   : > { %p501_p13 = por %p500_p12, %p499_p11 }
  0x3f   : > { %p502_p0 = pnand %p501_p13, %p495_p8 }
  0x41   : > { %505 = shalt.err (!%p502_p0)
}
  0x42   : > { %s543_s6 = smov 128   ;;  %s544_s7 = smov 8  }
  0x43   : > { %437 = dma.vmem_to_hbm [thread:$0]  (%p603_p5), %s767_s10, 4096, %s765_s17, %s776_s19, %s543_s6, %s543_s6, %s544_s7  }
  0x44 PF: > { %p443_p1 = scmp.ge.s32.totalorder %s540_s15, 2  ;;  %s375_s8 = sand.u32 1, %s528_s12  }
  0x45   : > { %s376_s9 = scalar_lea.sflag [#allocation3], %s375_s8 }
  0x46   : > { %p440_p2 = pnand %p443_p1, %p607_p6 }
  0x48   : > { %523 = dma.done.wait (!%p440_p2), %s376_s9, 4096  }
  0x49   : > { %525 = vsyncadd (!%p440_p2), %s376_s9, 4294963200  ;;  %p13_p3 = scmp.ge.s32.totalorder %s590_s18, 4   ;;  %s823_s12 = smov %s532_s13 }
  0x4a   : > { %s824_s13 = smov %s536_s14  ;;  %s825_s14 = smov %s601_s21 }
  0x4b   : > { %s826_s15 = smov %s590_s18  ;;  %15 = sbr.rel (!%p13_p3) target bundleno = 3 (0x3), region = 67 }
  0x52   :  { %381 = vsyncpa [#allocation3], 1 }
  0x53   :  { %383 = vsyncpa [#allocation3 + $0x1], 1 }

// kernel: lu_conv2d.2
= control target key start
LH: loop header
LB: loop body
LE: loop exit
PB: predicated region body
PF: predicated region fallthrough
CT: control target
= control target key end

     0   :  { %s2166_s15 = smov 0   ;;  %s2168_s16 = smov 0   ;;  %s3020_s0 = inlined_call_operand.vmem [shape: bf16[2,16,16,16], index: 0, kind: input, shape index: {}]   ;;  %s3021_s1 = inlined_call_operand.vmem [shape: bf16[144,128], index: 1, kind: input, shape index: {}]   ;;  %s3022_s2 = inlined_call_operand.vmem [shape: f32[1,128], index: 2, kind: input, shape index: {}]   ;;  %s3023_s3 = inlined_call_operand.vmem [shape: f32[2,16,16,128], index: 3, kind: output, shape index: {0}]   ;;  %s3024_s4 = inlined_call_operand.vmem [shape: f32[2,2,128], index: 4, kind: output, shape index: {1}]  }
   0x1   :  { %s2170_s17 = smov 0  }
   0x2 LB: > { %s27_s18 = sadd.s32 1, %s2127_s16  ;;  %p1982_p0 = scmp.ge.s32.totalorder %s2131_s17, 1  ;;  %s2131_s17 = sphi %s2170_s17, %s15_s17   ;;  %s2127_s16 = sphi %s2168_s16, %s3028_s16   ;;  %s2123_s15 = sphi %s2166_s15, %s3027_s15  }
   0x3   : > { %p29_p1 = scmp.ge.s32.totalorder %s27_s18, 2  ;;  %p198_p2 = scmp.lt.s32.totalorder %s2131_s17, 3 }
   0x5   : > { %s3030_s18 = smov (%p29_p1, %s27_s18), 0  ;;  %p199_p3 = pnand %p1982_p0, %p198_p2 }
   0x6   : > { %v2133_v0 = vmov (!%p199_p3), 0   ;;  %p241_p4 = scmp.lt.s32.totalorder (!%p199_p3), %s2123_s15, 1  ;;  %v2095_v2 = vld [vmem:[%s3021_s1] sm:$0xff] (!%p199_p3)   ;;  %vm1089_vm0 = vcmask (!%p199_p3), 130048   ;;  %s2134_s21 = smov (!%p199_p3), 16   ;;  %v2096_v3 = vld [vmem:[%s3021_s1 + $0x8] sm:$0xff] (!%p199_p3)  }
   0x7   : > { %202 = sbr.rel (%p199_p3) target bundleno = 595 (0x253), region = 32  ;;  %v2185_v1 = vrot.slane (!%p199_p3), %v2133_v0, 1  ;;  %1528 = vmatprep.subr.bf16.mxu0 (!%p199_p3), %v2133_v0  ;;  %2034 = vmatprep.subr.bf16.mxu1 (!%p199_p3), %v2133_v0  ;;  %vm530_vm1 = vsmask.f32 (!%p199_p3), 256  ;;  %vm529_vm2 = vcmask (!%p199_p3), 1040384   ;;  %v2097_v4 = vld [vmem:[%s3021_s1 + $0x10] sm:$0xff] (!%p199_p3)  }
   0x8   : > { %1529 = vmatpush1.bf16.msra.mxu0 (!%p199_p3), %v2095_v2  ;;  %2043 = vmatpush1.bf16.msra.mxu1 (!%p199_p3), %v2095_v2  ;;  %s2135_s30 = smov (!%p199_p3), 32   ;;  %vm2219_vm3 = vmand (!%p199_p3), %vm529_vm2, %vm530_vm1  ;;  %v2098_v13 = vld [vmem:[%s3021_s1 + $0x18] sm:$0xff] (!%p199_p3)   ;;  %vm784_vm4 = vcmask (!%p199_p3), 1046528   ;;  %vm564_vm5 = vsmask.f32 (!%p199_p3), 7424  ;;  %s2136_s7 = smov (!%p199_p3), 48  }
   0x9   : > { %865 = vrot.lane.b32.xlu0 (!%p199_p3), %v2185_v1, %s2134_s21  ;;  %1367 = vst.msk [vmem:[#allocation2 + $0xf8] sm:$0xff] (!%p199_p3), %vm1089_vm0, %v2185_v1  ;;  %1530 = vmatprep.subr.bf16.mxu0 (!%p199_p3), %v2133_v0  ;;  %s2137_s8 = smov (!%p199_p3), 80   ;;  %s2138_s9 = smov (!%p199_p3), 96   ;;  %v2099_v52 = vld [vmem:[%s3021_s1 + $0x20] sm:$0xff] (!%p199_p3)   ;;  %vm1122_vm6 = vcmask (!%p199_p3), 261120   ;;  %vm1155_vm7 = vcmask (!%p199_p3), 392192  }
   0xa   : > { %2035 = vmatprep.subr.bf16.mxu1 (!%p199_p3), %v2133_v0  ;;  %s2139_s14 = smov (!%p199_p3), 112   ;;  %s2140_s22 = smov (!%p199_p3), 64   ;;  %vm1188_vm8 = vcmask (!%p199_p3), 523264   ;;  %vm1221_vm9 = vcmask (!%p199_p3), 654336   ;;  %vm1254_vm10 = vcmask (!%p199_p3), 785408   ;;  %vm1287_vm11 = vcmask (!%p199_p3), 916480  }
   0xc   : > { %1531 = vmatpush1.bf16.msra.mxu0 (!%p199_p3), %v2096_v3  ;;  %2044 = vmatpush1.bf16.msra.mxu1 (!%p199_p3), %v2096_v3 }
   0xd   : > { %897 = vrot.lane.b32.xlu0 (!%p199_p3), %v2185_v1, %s2135_s30  ;;  %1532 = vmatprep.subr.bf16.mxu0 (!%p199_p3), %v2133_v0 }
   0xe   : > { %s3032_s15 = smov (!%p241_p4, %s2123_s15), 1  ;;  %2036 = vmatprep.subr.bf16.mxu1 %v2133_v0 }
   0xf   : > { %s2032_s24 = sshll.u32 %s3032_s15, 7  ;;  %s1987_s6 = sshll.u32 %s3032_s15, 1 }
  0x10   : > { %s2207_s27 = scalar_lea.vmem %s3020_s0, %s2032_s24  ;;  %1533 = vmatpush1.bf16.msra.mxu0 %v2097_v4  ;;  %2045 = vmatpush1.bf16.msra.mxu1 %v2097_v4  ;;  %v2100_v4 = vld [vmem:[%s3021_s1 + $0x28] sm:$0xff]  }
  0x11   : > { %v2084_v5 = vld [vmem:[%s2207_s27] sm:$0xff]   ;;  %v2085_v6 = vld [vmem:[%s2207_s27 + $0x8] sm:$0xff]   ;;  %v2086_v12 = vld [vmem:[%s2207_s27 + $0x10] sm:$0xff]   ;;  %1534 = vmatprep.subr.bf16.mxu0 %v2133_v0  ;;  %2037 = vmatprep.subr.bf16.mxu1 %v2133_v0 }
  0x12   : > { %v386_v7 = vshrl.u32 %v2084_v5, 16  ;;  %v389_v8 = vshll.u32 %v2084_v5, 16  ;;  %v393_v10 = vshrl.u32 %v2085_v6, 16  ;;  %v396_v11 = vshll.u32 %v2085_v6, 16  ;;  %v2087_v15 = vld [vmem:[%s2207_s27 + $0x18] sm:$0xff]   ;;  %v2236_v24 = vld [vmem:[%s2207_s27 + $0x20] sm:$0xff]  }
  0x13   : > { %v400_v17 = vshrl.u32 %v2086_v12, 16  ;;  %v403_v23 = vshll.u32 %v2086_v12, 16  ;;  %v407_v28 = vshrl.u32 %v2087_v15, 16  ;;  %v410_v38 = vshll.u32 %v2087_v15, 16  ;;  %v2089_v54 = vld [vmem:[%s2207_s27 + $0x38] sm:$0xff]   ;;  %v2090_v61 = vld [vmem:[%s2207_s27 + $0x40] sm:$0xff]  }
  0x14   : > { %v388_v14 = vrot.slane %v386_v7, 7  ;;  %v395_v16 = vrot.slane %v393_v10, 7  ;;  %1535 = vmatpush1.bf16.msra.mxu0 %v2098_v13  ;;  %2046 = vmatpush1.bf16.msra.mxu1 %v2098_v13  ;;  %v414_v39 = vshrl.u32 %v2236_v24, 16  ;;  %v417_v59 = vshll.u32 %v2236_v24, 16  ;;  %v2101_v10 = vld [vmem:[%s3021_s1 + $0x30] sm:$0xff]  }
  0x15   : > { %v402_v27 = vrot.slane %v400_v17, 7  ;;  %1536 = vmatprep.subr.bf16.mxu0 %v2133_v0  ;;  %2038 = vmatprep.subr.bf16.mxu1 %v2133_v0  ;;  %v409_v43 = vrot.slane %v407_v28, 7  ;;  %v435_v6 = vshrl.u32 %v2089_v54, 16  ;;  %v442_v13 = vshrl.u32 %v2090_v61, 16 }
  0x16   : > { %v391_v18 = vor.u32 %v389_v8, %v388_v14  ;;  %v548_v19 = vsel %vm2219_vm3, %v388_v14, 0  ;;  %v398_v21 = vor.u32 %v396_v11, %v395_v16  ;;  %v549_v22 = vsel %vm2219_vm3, %v395_v16, 0 }
  0x17   : > { %v788_v20 = vrot.slane %v548_v19, 1  ;;  %v791_v26 = vrot.slane %v549_v22, 1  ;;  %v593_v31 = vshll.u32 %v549_v22, 16  ;;  %v405_v37 = vor.u32 %v403_v23, %v402_v27 }
  0x18   : > { %v2240_v25 = vsel %vm2219_vm3, 0, %v391_v18  ;;  %v2247_v30 = vsel %vm2219_vm3, 0, %v398_v21  ;;  %v2263_v42 = vsel %vm2219_vm3, %v402_v27, 0  ;;  %v581_v45 = vshll.u32 %v548_v19, 16  ;;  %1537 = vmatpush1.bf16.msra.mxu0 %v2099_v52  ;;  %2047 = vmatpush1.bf16.msra.mxu1 %v2099_v52 }
  0x19   : > { %929 = vrot.lane.b32.xlu1 %v2240_v25, %s2136_s7  ;;  %v787_v29 = vrot.slane %v2240_v25, 1  ;;  %v586_v32 = vshrl.u32 %v2247_v30, 16  ;;  %v588_v33 = vshll.u32 %v2247_v30, 16  ;;  %v790_v34 = vrot.slane %v2247_v30, 1  ;;  %1538 = vmatprep.subr.bf16.mxu0 %v2133_v0 }
  0x1a   : > { %v576_v35 = vshll.u32 %v2240_v25, 16  ;;  %v595_v44 = vrot.slane %v593_v31, 1  ;;  %v2271_v46 = vsel %vm2219_vm3, 0, %v405_v37  ;;  %v794_v47 = vrot.slane %v2263_v42, 1  ;;  %2039 = vmatprep.subr.bf16.mxu1 %v2133_v0 }
  0x1b   : > { %v789_v36 = vsel %vm784_vm4, %v787_v29, %v788_v20  ;;  %v590_v40 = vrot.slane %v588_v33, 1  ;;  %v2259_v41 = vsel %vm784_vm4, %v790_v34, %v791_v26  ;;  %v574_v49 = vshrl.u32 %v2240_v25, 16  ;;  %v2103_v26 = vld [vmem:[%s3021_s1 + $0x38] sm:$0xff]  }
  0x1c   : > { %993 = vrot.lane.b32.xlu0 %v789_v36, %s2137_s8  ;;  %1337 = vst.msk [vmem:[#allocation2 + $0x8] sm:$0xff] %vm1089_vm0, %v2259_v41  ;;  %v578_v50 = vrot.slane %v576_v35, 1  ;;  %v793_v51 = vrot.slane %v2271_v46, 1  ;;  %v412_v53 = vor.u32 %v410_v38, %v409_v43  ;;  %v2286_v56 = vsel %vm2219_vm3, %v409_v43, 0  ;;  %1539 = vmatpush1.bf16.msra.mxu0 %v2100_v4  ;;  %v2092_v38 = vld [vmem:[%s2207_s27 + $0x48] sm:$0xff]   ;;  %v2104_v43 = vld [vmem:[%s3021_s1 + $0x40] sm:$0xff]  }
  0x1d   : > { %1025 = vrot.lane.b32.xlu1 %v2247_v30, %s2138_s9  ;;  %v591_v48 = vor.u32 %v590_v40, %v586_v32  ;;  %v416_v58 = vrot.slane %v414_v39, 7  ;;  %v797_v60 = vrot.slane %v2286_v56, 1  ;;  %v583_v63 = vrot.slane %v581_v45, 1  ;;  %1540 = vmatprep.subr.bf16.mxu0 %v2133_v0  ;;  %v2091_v32 = vld [vmem:[%s2207_s27 + $0x28] sm:$0xff]  }
  0x1e   : > { %v2282_v55 = vsel %vm784_vm4, %v793_v51, %v794_v47  ;;  %v579_v62 = vor.u32 %v578_v50, %v574_v49  ;;  %v600_v2 = vshll.u32 %v2271_v46, 16  ;;  %v2302_v3 = vsel %vm2219_vm3, 0, %v412_v53  ;;  %2048 = vmatpush1.bf16.msra.mxu1 %v2100_v4  ;;  %v2094_v4 = vld [vmem:[%s2207_s27 + $0x50] sm:$0xff]  }
  0x1f   : > { %v2291_v57 = vsel %vm564_vm5, %v591_v48, %v595_v44  ;;  %1339 = vst.msk [vmem:[#allocation2 + $0x18] sm:$0xff] %vm1089_vm0, %v2282_v55  ;;  %v796_v5 = vrot.slane %v2302_v3, 1  ;;  %v419_v7 = vor.u32 %v417_v59, %v416_v58  ;;  %v438_v8 = vshll.u32 %v2089_v54, 16  ;;  %2040 = vmatprep.subr.bf16.mxu1 %v2133_v0 }
  0x20   : > { %899 = vrot.lane.b32.xlu0 %v789_v36, %s2135_s30  ;;  %v437_v12 = vrot.slane %v435_v6, 7  ;;  %v584_v14 = vsel %vm564_vm5, %v579_v62, %v583_v63  ;;  %v598_v15 = vshrl.u32 %v2271_v46, 16  ;;  %v602_v16 = vrot.slane %v600_v2, 1  ;;  %1541 = vmatpush1.bf16.msra.mxu0 %v2101_v10 }
  0x21   : > { %931 = vrot.lane.b32.xlu1 %v2247_v30, %s2136_s7  ;;  %v2317_v11 = vsel %vm784_vm4, %v796_v5, %v797_v60  ;;  %v605_v17 = vshll.u32 %v2263_v42, 16  ;;  %v444_v19 = vrot.slane %v442_v13, 7  ;;  %v445_v20 = vshll.u32 %v2090_v61, 16  ;;  %1542 = vmatprep.subr.bf16.mxu0 %v2133_v0  ;;  %v2093_v42 = vld [vmem:[%s2207_s27 + $0x30] sm:$0xff]  }
  0x22   : > { %1341 = vst.msk [vmem:[#allocation2 + $0x28] sm:$0xff] %vm1089_vm0, %v2317_v11  ;;  %v440_v18 = vor.u32 %v438_v8, %v437_v12  ;;  %v2330_v22 = vsel %vm2219_vm3, 0, %v419_v7  ;;  %v2334_v23 = vsel %vm2219_vm3, %v416_v58, 0  ;;  %v2338_v24 = vsel %vm2219_vm3, %v437_v12, 0  ;;  %2049 = vmatpush1.bf16.msra.mxu1 %v2101_v10 }
  0x23   : > { %v1369_v21 = vld [vmem:[#allocation2 + $0x8] sm:$0xff]  ;;  %v809_v27 = vrot.slane %v2338_v24, 1  ;;  %v447_v28 = vor.u32 %v445_v20, %v444_v19  ;;  %v799_v29 = vrot.slane %v2330_v22, 1  ;;  %v800_v31 = vrot.slane %v2334_v23, 1  ;;  %2041 = vmatprep.subr.bf16.mxu1 %v2133_v0 }
  0x24   : > { %1057 = vrot.lane.b32.xlu0 %v2291_v57, %s2139_s14  ;;  %v603_v33 = vor.u32 %v602_v16, %v598_v15  ;;  %v607_v34 = vrot.slane %v605_v17, 1  ;;  %v2351_v35 = vsel %vm2219_vm3, 0, %v440_v18  ;;  %2014 = vmatprep.mubr.msk.bf16.mxu0 %vm1089_vm0, %v1369_v21  ;;  %v612_v39 = vshll.u32 %v2302_v3, 16 }
  0x25   : > { %995 = vrot.lane.b32.xlu1 %v2259_v41, %s2137_s8  ;;  %v808_v36 = vrot.slane %v2351_v35, 1  ;;  %v2356_v37 = vsel %vm784_vm4, %v799_v29, %v800_v31  ;;  %v2365_v40 = vsel %vm2219_vm3, 0, %v447_v28  ;;  %1543 = vmatpush1.bf16.msra.mxu0 %v2103_v26  ;;  %v2379_v45 = vsel %vm2219_vm3, %v444_v19, 0 }
  0x26   : > { %1343 = vst.msk [vmem:[#allocation2 + $0x38] sm:$0xff] %vm1089_vm0, %v2356_v37  ;;  %v421_v47 = vshrl.u32 %v2091_v32, 16  ;;  %v424_v48 = vshll.u32 %v2091_v32, 16  ;;  %1544 = vmatprep.subr.bf16.mxu0 %v2133_v0  ;;  %v2383_v49 = vsel %vm564_vm5, %v603_v33, %v607_v34  ;;  %v617_v50 = vshll.u32 %v2286_v56, 16  ;;  %2050 = vmatpush1.bf16.msra.mxu1 %v2103_v26  ;;  %v2102_v34 = vld [vmem:[%s2207_s27 + $0x58] sm:$0xff]  }
  0x27   : > { %v2375_v44 = vsel %vm784_vm4, %v808_v36, %v809_v27  ;;  %v811_v51 = vrot.slane %v2365_v40, 1  ;;  %v812_v52 = vrot.slane %v2379_v45, 1  ;;  %v610_v53 = vshrl.u32 %v2302_v3, 16  ;;  %2042 = vmatprep.subr.bf16.mxu1 %v2133_v0 }
  0x28   : > { %963 = vrot.lane.b32.xlu0 %v2291_v57, %s2140_s22  ;;  %1349 = vst.msk [vmem:[#allocation2 + $0x68] sm:$0xff] %vm1089_vm0, %v2375_v44  ;;  %v423_v54 = vrot.slane %v421_v47, 7  ;;  %v449_v58 = vshrl.u32 %v2092_v38, 16  ;;  %v452_v59 = vshll.u32 %v2092_v38, 16  ;;  %v614_v56 = vrot.slane %v612_v39, 1  ;;  %v2105_v38 = vld [vmem:[%s2207_s27 + $0x60] sm:$0xff]  }
  0x29   : > { %961 = vrot.lane.b32.xlu1 %v584_v14, %s2140_s22  ;;  %v2395_v60 = vsel %vm784_vm4, %v811_v51, %v812_v52  ;;  %v428_v61 = vshrl.u32 %v2093_v42, 16  ;;  %1545 = vmatpush1.bf16.msra.mxu0 %v2104_v43  ;;  %v431_v2 = vshll.u32 %v2093_v42, 16  ;;  %v619_v10 = vrot.slane %v617_v50, 1 }
  0x2a   : > { %v426_v62 = vor.u32 %v424_v48, %v423_v54  ;;  %1351 = vst.msk [vmem:[#allocation2 + $0x78] sm:$0xff] %vm1089_vm0, %v2395_v60  ;;  %v451_v63 = vrot.slane %v449_v58, 7  ;;  %v2404_v5 = vsel %vm2219_vm3, %v423_v54, 0  ;;  %2051 = vmatpush1.bf16.msra.mxu1 %v2104_v43  ;;  %v615_v8 = vor.u32 %v614_v56, %v610_v53 }
  0x2b   : > { %v803_v7 = vrot.slane %v2404_v5, 1  ;;  %v456_v17 = vshrl.u32 %v2094_v4, 16  ;;  %v459_v28 = vshll.u32 %v2094_v4, 16  ;;  %v624_v39 = vshll.u32 %v2330_v22, 16 }
  0x2c   : > { %1027 = vrot.lane.b32.xlu0 %v2271_v46, %s2138_s9  ;;  %v454_v6 = vor.u32 %v452_v59, %v451_v63  ;;  %v2411_v12 = vsel %vm2219_vm3, 0, %v426_v62  ;;  %v2415_v13 = vsel %vm2219_vm3, %v451_v63, 0  ;;  %v463_v50 = vshrl.u32 %v2102_v34, 16  ;;  %v2106_v62 = vld [vmem:[%s2207_s27 + $0x68] sm:$0xff]  }
  0x2d   : > { %867 = vrot.lane.b32.xlu1 %v584_v14, %s2134_s21  ;;  %v802_v14 = vrot.slane %v2411_v12, 1  ;;  %v815_v16 = vrot.slane %v2415_v13, 1  ;;  %v458_v27 = vrot.slane %v456_v17, 7  ;;  %v629_v51 = vshll.u32 %v2334_v23, 16 }
  0x2e   : > { %v2423_v18 = vsel %vm2219_vm3, 0, %v454_v6  ;;  %v466_v52 = vshll.u32 %v2102_v34, 16  ;;  %v470_v53 = vshrl.u32 %v2105_v38, 16  ;;  %v473_v54 = vshll.u32 %v2105_v38, 16 }
  0x2f   : > { %v2426_v19 = vsel %vm784_vm4, %v802_v14, %v803_v7  ;;  %v814_v20 = vrot.slane %v2423_v18, 1  ;;  %v461_v32 = vor.u32 %v459_v28, %v458_v27  ;;  %v2458_v36 = vsel %vm2219_vm3, %v458_v27, 0 }
  0x30   : > { %869 = vrot.lane.b32.xlu0 %v2291_v57, %s2134_s21  ;;  %v430_v57 = vrot.slane %v428_v61, 7  ;;  %1345 = vst.msk [vmem:[#allocation2 + $0x48] sm:$0xff] %vm1089_vm0, %v2426_v19  ;;  %v818_v43 = vrot.slane %v2458_v36, 1  ;;  %v622_v58 = vshrl.u32 %v2330_v22, 16  ;;  %v626_v59 = vrot.slane %v624_v39, 1 }
  0x31   : > { %1059 = vrot.lane.b32.xlu1 %v2383_v49, %s2139_s14  ;;  %v2443_v26 = vsel %vm784_vm4, %v814_v20, %v815_v16  ;;  %v2470_v47 = vsel %vm2219_vm3, 0, %v461_v32  ;;  %v465_v61 = vrot.slane %v463_v50, 7  ;;  %v660_v63 = vshll.u32 %v2351_v35, 16 }
  0x32   : > { %v433_v15 = vor.u32 %v431_v2, %v430_v57  ;;  %1353 = vst.msk [vmem:[#allocation2 + $0x88] sm:$0xff] %vm1089_vm0, %v2443_v26  ;;  %v2449_v29 = vsel %vm2219_vm3, %v430_v57, 0  ;;  %v817_v48 = vrot.slane %v2470_v47, 1  ;;  %v627_v6 = vor.u32 %v626_v59, %v622_v58 }
  0x33   : > { %v806_v33 = vrot.slane %v2449_v29, 1  ;;  %v468_v23 = vor.u32 %v466_v52, %v465_v61  ;;  %v2490_v2 = vsel %vm2219_vm3, %v465_v61, 0  ;;  %v665_v7 = vshll.u32 %v2338_v24, 16 }
  0x34   : > { %933 = vrot.lane.b32.xlu0 %v2271_v46, %s2136_s7  ;;  %v2440_v21 = vsel %vm2219_vm3, 0, %v433_v15  ;;  %v2482_v56 = vsel %vm784_vm4, %v817_v48, %v818_v43  ;;  %v821_v4 = vrot.slane %v2490_v2, 1  ;;  %v658_v14 = vshrl.u32 %v2351_v35, 16 }
  0x35   : > { %901 = vrot.lane.b32.xlu1 %v2259_v41, %s2135_s30  ;;  %v2432_v41 = vsel %vm564_vm5, %v615_v8, %v619_v10  ;;  %v805_v31 = vrot.slane %v2440_v21, 1  ;;  %1355 = vst.msk [vmem:[#allocation2 + $0x98] sm:$0xff] %vm1089_vm0, %v2482_v56  ;;  %v2500_v8 = vsel %vm2219_vm3, 0, %v468_v23  ;;  %v477_v10 = vshrl.u32 %v2106_v62, 16 }
  0x36   : > { %v662_v15 = vrot.slane %v660_v63, 1  ;;  %v820_v16 = vrot.slane %v2500_v8, 1  ;;  %v480_v32 = vshll.u32 %v2106_v62, 16  ;;  %v667_v38 = vrot.slane %v665_v7, 1 }
  0x37   : > { %v2465_v42 = vsel %vm784_vm4, %v805_v31, %v806_v33  ;;  %v479_v31 = vrot.slane %v477_v10, 7  ;;  %v672_v50 = vshll.u32 %v2365_v40, 16  ;;  %v677_v52 = vshll.u32 %v2379_v45, 16 }
  0x38   : > { %997 = vrot.lane.b32.xlu0 %v2282_v55, %s2137_s8  ;;  %1347 = vst.msk [vmem:[#allocation2 + $0x58] sm:$0xff] %vm1089_vm0, %v2465_v42  ;;  %v2512_v24 = vsel %vm784_vm4, %v820_v16, %v821_v4  ;;  %v663_v34 = vor.u32 %v662_v15, %v658_v14  ;;  %v636_v45 = vshll.u32 %v2411_v12, 16  ;;  %v634_v4 = vshrl.u32 %v2411_v12, 16 }
  0x39   : > { %965 = vrot.lane.b32.xlu1 %v2383_v49, %s2140_s22  ;;  %1357 = vst.msk [vmem:[#allocation2 + $0xa8] sm:$0xff] %vm1089_vm0, %v2512_v24  ;;  %v482_v43 = vor.u32 %v480_v32, %v479_v31  ;;  %v674_v58 = vrot.slane %v672_v50, 1  ;;  %v684_v10 = vshll.u32 %v2423_v18, 16  ;;  %v1385_v15 = vld [vmem:[#allocation2 + $0x88] sm:$0xff]  ;;  %v646_v9 = vshrl.u32 %v2440_v21, 16 }
  0x3a   : > { %v2536_v48 = vsel %vm564_vm5, %v663_v34, %v667_v38  ;;  %2022 = vmatprep.mubr.msk.bf16.mxu1 %vm1089_vm0, %v1385_v15 }
  0x3b   : > { %v686_v32 = vrot.slane %v684_v10, 1 }
  0x3c   : > { %1061 = vrot.lane.b32.xlu0 %v2432_v41, %s2139_s14 }
  0x3d   : > { %1029 = vrot.lane.b32.xlu1 %v2302_v3, %s2138_s9 }
  0x40   : > { %903 = vrot.lane.b32.xlu0 %v2282_v55, %s2135_s30  ;;  %v472_v55 = vrot.slane %v470_v53, 7  ;;  %v2548_v53 = vsel %vm2219_vm3, 0, %v482_v43 }
  0x41   : > { %871 = vrot.lane.b32.xlu1 %v2383_v49, %s2134_s21  ;;  %v631_v49 = vrot.slane %v629_v51, 1  ;;  %v2107_v51 = vld [vmem:[%s2207_s27 + $0x70] sm:$0xff]   ;;  %v826_v59 = vrot.slane %v2548_v53, 1 }
  0x42   : > { %v475_v57 = vor.u32 %v473_v54, %v472_v55  ;;  %v2506_v17 = vsel %vm2219_vm3, %v472_v55, 0  ;;  %v2552_v54 = vsel %vm2219_vm3, %v479_v31, 0  ;;  %v484_v61 = vshrl.u32 %v2107_v51, 16 }
  0x43   : > { %v824_v20 = vrot.slane %v2506_v17, 1  ;;  %v2524_v33 = vsel %vm564_vm5, %v627_v6, %v631_v49  ;;  %v679_v55 = vrot.slane %v677_v52, 1  ;;  %v487_v49 = vshll.u32 %v2107_v51, 16 }
  0x44   : > { %967 = vrot.lane.b32.xlu0 %v2432_v41, %s2140_s22  ;;  %v2516_v27 = vsel %vm2219_vm3, 0, %v475_v57  ;;  %v486_v23 = vrot.slane %v484_v61, 7  ;;  %v638_v57 = vrot.slane %v636_v45, 1  ;;  %v641_v6 = vshll.u32 %v2404_v5, 16  ;;  %v2108_v5 = vld [vmem:[%s2207_s27 + $0x78] sm:$0xff]  }
  0x45   : > { %935 = vrot.lane.b32.xlu1 %v2302_v3, %s2136_s7  ;;  %v823_v28 = vrot.slane %v2516_v27, 1  ;;  %v682_v31 = vshrl.u32 %v2423_v18, 16 }
  0x46   : > { %v489_v14 = vor.u32 %v487_v49, %v486_v23  ;;  %v639_v16 = vor.u32 %v638_v57, %v634_v4  ;;  %v2590_v38 = vsel %vm2219_vm3, %v486_v23, 0  ;;  %v648_v49 = vshll.u32 %v2440_v21, 16 }
  0x47   : > { %v2527_v39 = vsel %vm784_vm4, %v823_v28, %v824_v20  ;;  %v643_v20 = vrot.slane %v641_v6, 1  ;;  %v689_v28 = vshll.u32 %v2415_v13, 16  ;;  %v830_v50 = vrot.slane %v2590_v38, 1 }
  0x48   : > { %1031 = vrot.lane.b32.xlu0 %v2330_v22, %s2138_s9  ;;  %1359 = vst.msk [vmem:[#allocation2 + $0xb8] sm:$0xff] %vm1089_vm0, %v2527_v39  ;;  %v2586_v34 = vsel %vm2219_vm3, 0, %v489_v14  ;;  %v687_v52 = vor.u32 %v686_v32, %v682_v31  ;;  %v650_v4 = vrot.slane %v648_v49, 1  ;;  %v653_v57 = vshll.u32 %v2449_v29, 16 }
  0x49   : > { %999 = vrot.lane.b32.xlu1 %v2317_v11, %s2137_s8  ;;  %v829_v43 = vrot.slane %v2586_v34, 1  ;;  %v644_v13 = vsel %vm564_vm5, %v639_v16, %v643_v20  ;;  %v696_v6 = vshll.u32 %v2470_v47, 16  ;;  %v694_v14 = vshrl.u32 %v2470_v47, 16 }
  0x4a   : > { %v655_v10 = vrot.slane %v653_v57, 1  ;;  %v701_v16 = vshll.u32 %v2458_v36, 16 }
  0x4b   : > { %v2600_v51 = vsel %vm784_vm4, %v829_v43, %v830_v50  ;;  %v698_v15 = vrot.slane %v696_v6, 1 }
  0x4c   : > { %873 = vrot.lane.b32.xlu0 %v2432_v41, %s2134_s21  ;;  %v670_v41 = vshrl.u32 %v2365_v40, 16  ;;  %1363 = vst.msk [vmem:[#allocation2 + $0xd8] sm:$0xff] %vm1089_vm0, %v2600_v51 }
  0x4d   : > { %1063 = vrot.lane.b32.xlu1 %v2524_v33, %s2139_s14  ;;  %v699_v20 = vor.u32 %v698_v15, %v694_v14  ;;  %v1371_v14 = vld [vmem:[#allocation2 + $0x18] sm:$0xff] }
  0x4e   : > { %v675_v63 = vor.u32 %v674_v58, %v670_v41  ;;  %v491_v41 = vshrl.u32 %v2108_v5, 16  ;;  %v691_v58 = vrot.slane %v689_v28, 1  ;;  %v703_v28 = vrot.slane %v701_v16, 1 }
  0x50   : > { %905 = vrot.lane.b32.xlu0 %v2317_v11, %s2135_s30  ;;  %v827_v11 = vrot.slane %v2552_v54, 1  ;;  %v2573_v7 = vsel %vm564_vm5, %v675_v63, %v679_v55  ;;  %v692_v61 = vsel %vm564_vm5, %v687_v52, %v691_v58  ;;  %v706_v58 = vshrl.u32 %v2500_v8, 16 }
  0x51   : > { %881 = vrot.lane.b32.xlu1 %v2536_v48, %s2134_s21 }
  0x52   : > { %v2559_v62 = vsel %vm784_vm4, %v826_v59, %v827_v11  ;;  %v493_v59 = vrot.slane %v491_v41, 7  ;;  %v494_v11 = vshll.u32 %v2108_v5, 16  ;;  %v2655_v5 = vsel %vm564_vm5, %v699_v20, %v703_v28 }
  0x53   : > { %1361 = vst.msk [vmem:[#allocation2 + $0xc8] sm:$0xff] %vm1089_vm0, %v2559_v62 }
  0x54   : > { %937 = vrot.lane.b32.xlu0 %v2330_v22, %s2136_s7  ;;  %v496_v45 = vor.u32 %v494_v11, %v493_v59  ;;  %v2621_v55 = vsel %vm2219_vm3, %v493_v59, 0  ;;  %v713_v11 = vshll.u32 %v2490_v2, 16 }
  0x55   : > { %913 = vrot.lane.b32.xlu1 %v2375_v44, %s2135_s30 }
  0x56   : > { %v2617_v63 = vsel %vm2219_vm3, 0, %v496_v45  ;;  %v715_v49 = vrot.slane %v713_v11, 1  ;;  %v720_v11 = vshll.u32 %v2516_v27, 16 }
  0x57   : > { %v846_v23 = vrot.slane %v2617_v63, 1 }
  0x58   : > { %969 = vrot.lane.b32.xlu0 %v2524_v33, %s2140_s22 }
  0x59   : > { %945 = vrot.lane.b32.xlu1 %v2365_v40, %s2136_s7 }
  0x5c   : > { %1001 = vrot.lane.b32.xlu0 %v2356_v37, %s2137_s8 }
  0x5d   : > { %977 = vrot.lane.b32.xlu1 %v2573_v7, %s2140_s22 }
  0x60   : > { %1033 = vrot.lane.b32.xlu0 %v2411_v12, %s2138_s9 }
  0x61   : > { %1009 = vrot.lane.b32.xlu1 %v2395_v60, %s2137_s8 }
  0x64   : > { %1065 = vrot.lane.b32.xlu0 %v644_v13, %s2139_s14 }
  0x65   : > { %1041 = vrot.lane.b32.xlu1 %v2423_v18, %s2138_s9 }
  0x68   : > { %875 = vrot.lane.b32.xlu0 %v2524_v33, %s2134_s21  ;;  %v847_v33 = vrot.slane %v2621_v55, 1 }
  0x69   : > { %1073 = vrot.lane.b32.xlu1 %v692_v61, %s2139_s14 }
  0x6c   : > { %907 = vrot.lane.b32.xlu0 %v2356_v37, %s2135_s30  ;;  %v2628_v37 = vsel %vm784_vm4, %v846_v23, %v847_v33 }
  0x6d   : > { %883 = vrot.lane.b32.xlu1 %v2573_v7, %s2134_s21  ;;  %1365 = vst.msk [vmem:[#allocation2 + $0xe8] sm:$0xff] %vm1089_vm0, %v2628_v37 }
  0x70   : > { %939 = vrot.lane.b32.xlu0 %v2411_v12, %s2136_s7 }
  0x71   : > { %915 = vrot.lane.b32.xlu1 %v2395_v60, %s2135_s30  ;;  %v651_v60 = vor.u32 %v650_v4, %v646_v9 }
  0x73   : > { %v656_v29 = vsel %vm564_vm5, %v651_v60, %v655_v10 }
  0x74   : > { %971 = vrot.lane.b32.xlu0 %v644_v13, %s2140_s22 }
  0x75   : > { %947 = vrot.lane.b32.xlu1 %v2423_v18, %s2136_s7 }
  0x78   : > { %1003 = vrot.lane.b32.xlu0 %v2426_v19, %s2137_s8 }
  0x79   : > { %979 = vrot.lane.b32.xlu1 %v692_v61, %s2140_s22 }
  0x7b   : > { %v866_v31 = vpop.permute.xlu0 %865 }
  0x7c   : > { %1035 = vrot.lane.b32.xlu0 %v2440_v21, %s2138_s9  ;;  %v1091_v52 = vsel %vm1089_vm0, 0, %v866_v31 }
  0x7d   : > { %1011 = vrot.lane.b32.xlu1 %v2443_v26, %s2137_s8 }
  0x7f   : > { %v898_v36 = vpop.permute.xlu0 %897 }
  0x80   : > { %1067 = vrot.lane.b32.xlu0 %v656_v29, %s2139_s14  ;;  %v1124_v45 = vsel %vm1122_vm6, %v1091_v52, %v898_v36 }
  0x81   : > { %1043 = vrot.lane.b32.xlu1 %v2470_v47, %s2138_s9 }
  0x84   : > { %877 = vrot.lane.b32.xlu0 %v644_v13, %s2134_s21 }
  0x85   : > { %1075 = vrot.lane.b32.xlu1 %v2655_v5, %s2139_s14 }
  0x88   : > { %909 = vrot.lane.b32.xlu0 %v2426_v19, %s2135_s30  ;;  %v708_v19 = vshll.u32 %v2500_v8, 16 }
  0x89   : > { %885 = vrot.lane.b32.xlu1 %v692_v61, %s2134_s21 }
  0x8a   : > { %v710_v59 = vrot.slane %v708_v19, 1 }
  0x8b   : > { %v930_v32 = vpop.permute.xlu1 %929 }
  0x8c   : > { %941 = vrot.lane.b32.xlu0 %v2440_v21, %s2136_s7  ;;  %v711_v33 = vor.u32 %v710_v59, %v706_v58  ;;  %v1157_v9 = vsel %vm1155_vm7, %v1124_v45, %v930_v32 }
  0x8d   : > { %917 = vrot.lane.b32.xlu1 %v2443_v26, %s2135_s30 }
  0x8e   : > { %v994_v43 = vpop.permute.xlu0 %993  ;;  %v2692_v10 = vsel %vm564_vm5, %v711_v33, %v715_v49  ;;  %v718_v49 = vshrl.u32 %v2516_v27, 16 }
  0x8f   : > { %v1026_v50 = vpop.permute.xlu1 %1025 }
  0x90   : > { %973 = vrot.lane.b32.xlu0 %v656_v29, %s2140_s22 }
  0x91   : > { %949 = vrot.lane.b32.xlu1 %v2470_v47, %s2136_s7 }
  0x92   : > { %v900_v13 = vpop.permute.xlu0 %899 }
  0x93   : > { %v932_v41 = vpop.permute.xlu1 %931 }
  0x94   : > { %1005 = vrot.lane.b32.xlu0 %v2465_v42, %s2137_s8 }
  0x95   : > { %981 = vrot.lane.b32.xlu1 %v2655_v5, %s2140_s22 }
  0x96   : > { %v1058_v26 = vpop.permute.xlu0 %1057 }
  0x97   : > { %v996_v61 = vpop.permute.xlu1 %995 }
  0x98   : > { %1037 = vrot.lane.b32.xlu0 %v2351_v35, %s2138_s9 }
  0x99   : > { %1013 = vrot.lane.b32.xlu1 %v2482_v56, %s2137_s8 }
  0x9a   : > { %v964_v23 = vpop.permute.xlu0 %963 }
  0x9b   : > { %v962_v4 = vpop.permute.xlu1 %961 }
  0x9c   : > { %v1190_v2 = vsel %vm1188_vm8, %v1157_v9, %v962_v4  ;;  %1069 = vrot.lane.b32.xlu0 %v2536_v48, %s2139_s14  ;;  %v722_v9 = vrot.slane %v720_v11, 1  ;;  %v725_v4 = vshll.u32 %v2506_v17, 16  ;;  %v742_v11 = vshrl.u32 %v2586_v34, 16 }
  0x9d   : > { %v1223_v57 = vsel %vm1221_vm9, %v1190_v2, %v994_v43  ;;  %1045 = vrot.lane.b32.xlu1 %v2500_v8, %s2138_s9 }
  0x9e   : > { %v1256_v6 = vsel %vm1254_vm10, %v1223_v57, %v1026_v50  ;;  %v1028_v60 = vpop.permute.xlu0 %1027 }
  0x9f   : > { %v1289_v15 = vsel %vm1287_vm11, %v1256_v6, %v1058_v26  ;;  %v868_v16 = vpop.permute.xlu1 %867  ;;  %v723_v6 = vor.u32 %v722_v9, %v718_v49 }
  0xa0   : > { %v1093_v20 = vsel %vm1089_vm0, %v2240_v25, %v868_v16  ;;  %879 = vrot.lane.b32.xlu0 %v656_v29, %s2134_s21  ;;  %1561 = vmatmul.mubr.bf16.vlgmr.msra.gmra.mrb[0].mxu0 %v1289_v15 }
  0xa1   : > { %v1126_v28 = vsel %vm1122_vm6, %v1093_v20, %v900_v13  ;;  %1077 = vrot.lane.b32.xlu1 %v2692_v10, %s2139_s14  ;;  %2015 = vmatprep.mubr.msk.bf16.mxu0 %vm1089_vm0, %v1371_v14 }
  0xa2   : > { %v1159_v31 = vsel %vm1155_vm7, %v1126_v28, %v932_v41  ;;  %v870_v36 = vpop.permute.xlu0 %869  ;;  %v1373_v41 = vld [vmem:[#allocation2 + $0x28] sm:$0xff] }
  0xa3   : > { %v1192_v32 = vsel %vm1188_vm8, %v1159_v31, %v964_v23  ;;  %v1060_v43 = vpop.permute.xlu1 %1059  ;;  %v1095_v25 = vsel %vm1089_vm0, %v2247_v30, %v870_v36  ;;  %v1375_v23 = vld [vmem:[#allocation2 + $0x38] sm:$0xff] }
  0xa4   : > { %v1225_v50 = vsel %vm1221_vm9, %v1192_v32, %v996_v61  ;;  %911 = vrot.lane.b32.xlu0 %v2465_v42, %s2135_s30 }
  0xa5   : > { %v1258_v29 = vsel %vm1254_vm10, %v1225_v50, %v1028_v60  ;;  %887 = vrot.lane.b32.xlu1 %v2655_v5, %s2134_s21  ;;  %v727_v60 = vrot.slane %v725_v4, 1 }
  0xa6   : > { %v1292_v13 = vsel %vm1287_vm11, %v1258_v29, %v1060_v43  ;;  %v934_v19 = vpop.permute.xlu0 %933  ;;  %v737_v43 = vshll.u32 %v2552_v54, 16 }
  0xa7   : > { %v902_v52 = vpop.permute.xlu1 %901  ;;  %v728_v20 = vsel %vm564_vm5, %v723_v6, %v727_v60 }
  0xa8   : > { %v1128_v26 = vsel %vm1122_vm6, %v1095_v25, %v902_v52  ;;  %943 = vrot.lane.b32.xlu0 %v2351_v35, %s2136_s7  ;;  %1569 = vmatmul.mubr.bf16.gmra.mrb[4].mxu0 %v1292_v13  ;;  %v1377_v13 = vld [vmem:[#allocation2 + $0x48] sm:$0xff] }
  0xa9   : > { %919 = vrot.lane.b32.xlu1 %v2482_v56, %s2135_s30  ;;  %2016 = vmatprep.mubr.msk.bf16.mxu0 %vm1089_vm0, %v1373_v41  ;;  %v1161_v42 = vsel %vm1155_vm7, %v1128_v26, %v934_v19  ;;  %v739_v41 = vrot.slane %v737_v43, 1 }
  0xaa   : > { %v998_v30 = vpop.permute.xlu0 %997 }
  0xab   : > { %v966_v5 = vpop.permute.xlu1 %965 }
  0xac   : > { %v1194_v58 = vsel %vm1188_vm8, %v1161_v42, %v966_v5  ;;  %975 = vrot.lane.b32.xlu0 %v2536_v48, %s2140_s22  ;;  %v744_v5 = vshll.u32 %v2586_v34, 16 }
  0xad   : > { %951 = vrot.lane.b32.xlu1 %v2500_v8, %s2136_s7  ;;  %v1227_v61 = vsel %vm1221_vm9, %v1194_v58, %v998_v30 }
  0xae   : > { %v1062_v59 = vpop.permute.xlu0 %1061 }
  0xaf   : > { %v1030_v56 = vpop.permute.xlu1 %1029 }
  0xb0   : > { %v1260_v45 = vsel %vm1254_vm10, %v1227_v61, %v1030_v56  ;;  %1007 = vrot.lane.b32.xlu0 %v2375_v44, %s2137_s8  ;;  %v746_v61 = vrot.slane %v744_v5, 1  ;;  %v749_v56 = vshll.u32 %v2590_v38, 16  ;;  %v835_v38 = vshll.u32 %v2617_v63, 16 }
  0xb1   : > { %v1295_v33 = vsel %vm1287_vm11, %v1260_v45, %v1062_v59  ;;  %983 = vrot.lane.b32.xlu1 %v2692_v10, %s2140_s22 }
  0xb2   : > { %v904_v48 = vpop.permute.xlu0 %903  ;;  %1577 = vmatmul.mubr.bf16.gmra.mrb[8].mxu0 %v1295_v33  ;;  %v751_v49 = vrot.slane %v749_v56, 1  ;;  %v1381_v56 = vld [vmem:[#allocation2 + $0x68] sm:$0xff] }
  0xb3   : > { %v872_v2 = vpop.permute.xlu1 %871  ;;  %2017 = vmatprep.mubr.msk.bf16.mxu0 %vm1089_vm0, %v1375_v23 }
  0xb4   : > { %v1097_v57 = vsel %vm1089_vm0, %v2271_v46, %v872_v2  ;;  %1039 = vrot.lane.b32.xlu0 %v2365_v40, %s2138_s9  ;;  %v732_v46 = vshll.u32 %v2548_v53, 16 }
  0xb5   : > { %1015 = vrot.lane.b32.xlu1 %v2512_v24, %s2137_s8  ;;  %v1130_v14 = vsel %vm1122_vm6, %v1097_v57, %v904_v48  ;;  %v747_v48 = vor.u32 %v746_v61, %v742_v11 }
  0xb6   : > { %v968_v44 = vpop.permute.xlu0 %967  ;;  %v734_v32 = vrot.slane %v732_v46, 1 }
  0xb7   : > { %v936_v15 = vpop.permute.xlu1 %935  ;;  %v752_v60 = vsel %vm564_vm5, %v747_v48, %v751_v49 }
  0xb8   : > { %v1163_v17 = vsel %vm1155_vm7, %v1130_v14, %v936_v15  ;;  %1071 = vrot.lane.b32.xlu0 %v2573_v7, %s2139_s14  ;;  %v730_v7 = vshrl.u32 %v2548_v53, 16  ;;  %v1379_v14 = vld [vmem:[#allocation2 + $0x58] sm:$0xff] }
  0xb9   : > { %1047 = vrot.lane.b32.xlu1 %v2516_v27, %s2138_s9  ;;  %v1196_v28 = vsel %vm1188_vm8, %v1163_v17, %v968_v44 }
  0xba   : > { %v1032_v16 = vpop.permute.xlu0 %1031 }
  0xbb   : > { %v1000_v31 = vpop.permute.xlu1 %999 }
  0xbc   : > { %v1229_v36 = vsel %vm1221_vm9, %v1196_v28, %v1000_v31  ;;  %889 = vrot.lane.b32.xlu0 %v2692_v10, %s2134_s21  ;;  %v735_v10 = vor.u32 %v734_v32, %v730_v7  ;;  %v837_v28 = vrot.slane %v835_v38, 1  ;;  %v840_v31 = vshll.u32 %v2621_v55, 16 }
  0xbd   : > { %1079 = vrot.lane.b32.xlu1 %v728_v20, %s2139_s14  ;;  %v1262_v25 = vsel %vm1254_vm10, %v1229_v36, %v1032_v16 }
  0xbe   : > { %v874_v50 = vpop.permute.xlu0 %873  ;;  %v740_v26 = vsel %vm564_vm5, %v735_v10, %v739_v41  ;;  %v842_v55 = vrot.slane %v840_v31, 1 }
  0xbf   : > { %v1064_v29 = vpop.permute.xlu1 %1063  ;;  %v1099_v45 = vsel %vm1089_vm0, %v2302_v3, %v874_v50  ;;  %v1387_v50 = vld [vmem:[#allocation2 + $0x98] sm:$0xff] }
  0xc0   : > { %v1298_v19 = vsel %vm1287_vm11, %v1262_v25, %v1064_v29  ;;  %953 = vrot.lane.b32.xlu0 %v2516_v27, %s2136_s7 }
  0xc1   : > { %921 = vrot.lane.b32.xlu1 %v2512_v24, %s2135_s30  ;;  %1585 = vmatmul.mubr.bf16.gmra.mrb[12].mxu0 %v1298_v19 }
  0xc2   : > { %v906_v52 = vpop.permute.xlu0 %905  ;;  %2018 = vmatprep.mubr.msk.bf16.mxu0 %vm1089_vm0, %v1377_v13 }
  0xc3   : > { %v882_v54 = vpop.permute.xlu1 %881  ;;  %v1132_v33 = vsel %vm1122_vm6, %v1099_v45, %v906_v52 }
  0xc4   : > { %1017 = vrot.lane.b32.xlu0 %v2527_v39, %s2137_s8  ;;  %v1107_v57 = vsel %vm1089_vm0, %v2351_v35, %v882_v54  ;;  %v833_v35 = vshrl.u32 %v2617_v63, 16 }
  0xc5   : > { %985 = vrot.lane.b32.xlu1 %v728_v20, %s2140_s22 }
  0xc6   : > { %v938_v30 = vpop.permute.xlu0 %937  ;;  %v838_v29 = vor.u32 %v837_v28, %v833_v35 }
  0xc7   : > { %v914_v42 = vpop.permute.xlu1 %913  ;;  %v1165_v9 = vsel %vm1155_vm7, %v1132_v33, %v938_v30 }
  0xc8   : > { %1081 = vrot.lane.b32.xlu0 %v740_v26, %s2139_s14  ;;  %v1140_v15 = vsel %vm1122_vm6, %v1107_v57, %v914_v42  ;;  %v843_v10 = vsel %vm564_vm5, %v838_v29, %v842_v55 }
  0xc9   : > { %1049 = vrot.lane.b32.xlu1 %v2548_v53, %s2138_s9 }
  0xca   : > { %v970_v24 = vpop.permute.xlu0 %969 }
  0xcb   : > { %v946_v58 = vpop.permute.xlu1 %945  ;;  %v1198_v2 = vsel %vm1188_vm8, %v1165_v9, %v970_v24  ;;  %v1389_v9 = vld [vmem:[#allocation2 + $0xa8] sm:$0xff] }
  0xcc   : > { %923 = vrot.lane.b32.xlu0 %v2527_v39, %s2135_s30  ;;  %v1173_v16 = vsel %vm1155_vm7, %v1140_v15, %v946_v58 }
  0xcd   : > { %891 = vrot.lane.b32.xlu1 %v728_v20, %s2134_s21 }
  0xce   : > { %v1002_v59 = vpop.permute.xlu0 %1001 }
  0xcf   : > { %v978_v23 = vpop.permute.xlu1 %977  ;;  %v1231_v3 = vsel %vm1221_vm9, %v1198_v2, %v1002_v59 }
  0xd0   : > { %987 = vrot.lane.b32.xlu0 %v740_v26, %s2140_s22  ;;  %v1206_v20 = vsel %vm1188_vm8, %v1173_v16, %v978_v23 }
  0xd1   : > { %955 = vrot.lane.b32.xlu1 %v2548_v53, %s2136_s7 }
  0xd2   : > { %v1034_v39 = vpop.permute.xlu0 %1033 }
  0xd3   : > { %v1010_v4 = vpop.permute.xlu1 %1009  ;;  %v1264_v44 = vsel %vm1254_vm10, %v1231_v3, %v1034_v39 }
  0xd4   : > { %1051 = vrot.lane.b32.xlu0 %v2586_v34, %s2138_s9  ;;  %v1239_v36 = vsel %vm1221_vm9, %v1206_v20, %v1010_v4 }
  0xd5   : > { %1019 = vrot.lane.b32.xlu1 %v2559_v62, %s2137_s8 }
  0xd6   : > { %v1066_v6 = vpop.permute.xlu0 %1065 }
  0xd7   : > { %v1301_v17 = vsel %vm1287_vm11, %v1264_v44, %v1066_v6  ;;  %v1042_v46 = vpop.permute.xlu1 %1041 }
  0xd8   : > { %893 = vrot.lane.b32.xlu0 %v740_v26, %s2134_s21  ;;  %1593 = vmatmul.mubr.bf16.gmra.mrb[16].mxu0 %v1301_v17  ;;  %v1272_v32 = vsel %vm1254_vm10, %v1239_v36, %v1042_v46 }
  0xd9   : > { %1083 = vrot.lane.b32.xlu1 %v752_v60, %s2139_s14  ;;  %2019 = vmatprep.mubr.msk.bf16.mxu0 %vm1089_vm0, %v1379_v14 }
  0xda   : > { %v876_v7 = vpop.permute.xlu0 %875 }
  0xdb   : > { %v1074_v43 = vpop.permute.xlu1 %1073  ;;  %v1101_v30 = vsel %vm1089_vm0, %v2330_v22, %v876_v7  ;;  %v1383_v7 = vld [vmem:[#allocation2 + $0x78] sm:$0xff] }
  0xdc   : > { %v1313_v25 = vsel %vm1287_vm11, %v1272_v32, %v1074_v43  ;;  %957 = vrot.lane.b32.xlu0 %v2586_v34, %s2136_s7 }
  0xdd   : > { %925 = vrot.lane.b32.xlu1 %v2559_v62, %s2135_s30  ;;  %1625 = vmatmul.mubr.bf16.vlgmr.msra.gmra.mrb[0].mxu1 %v1313_v25 }
  0xde   : > { %v908_v13 = vpop.permute.xlu0 %907  ;;  %2023 = vmatprep.mubr.msk.bf16.mxu1 %vm1089_vm0, %v1387_v50 }
  0xdf   : > { %v884_v19 = vpop.permute.xlu1 %883  ;;  %v1134_v24 = vsel %vm1122_vm6, %v1101_v30, %v908_v13 }
  0xe0   : > { %1021 = vrot.lane.b32.xlu0 %v2600_v51, %s2137_s8  ;;  %v1109_v22 = vsel %vm1089_vm0, %v2365_v40, %v884_v19  ;;  %v1391_v19 = vld [vmem:[#allocation2 + $0xb8] sm:$0xff] }
  0xe1   : > { %989 = vrot.lane.b32.xlu1 %v752_v60, %s2140_s22 }
  0xe2   : > { %v940_v41 = vpop.permute.xlu0 %939 }
  0xe3   : > { %v916_v52 = vpop.permute.xlu1 %915  ;;  %v1167_v58 = vsel %vm1155_vm7, %v1134_v24, %v940_v41 }
  0xe4   : > { %1085 = vrot.lane.b32.xlu0 %v843_v10, %s2139_s14  ;;  %v1142_v45 = vsel %vm1122_vm6, %v1109_v22, %v916_v52 }
  0xe5   : > { %1053 = vrot.lane.b32.xlu1 %v2617_v63, %s2138_s9 }
  0xe6   : > { %v972_v62 = vpop.permute.xlu0 %971 }
  0xe7   : > { %v948_v54 = vpop.permute.xlu1 %947 }
  0xe8   : > { %927 = vrot.lane.b32.xlu0 %v2600_v51, %s2135_s30  ;;  %v1200_v51 = vsel %vm1188_vm8, %v1167_v58, %v972_v62  ;;  %v1175_v39 = vsel %vm1155_vm7, %v1142_v45, %v948_v54 }
  0xe9   : > { %895 = vrot.lane.b32.xlu1 %v752_v60, %s2134_s21  ;;  %s2033_s21 = sshll.u32 %s3032_s15, 8 }
  0xea   : > { %v1004_v26 = vpop.permute.xlu0 %1003  ;;  %s2928_s5 = scalar_lea.vmem %s3023_s3, %s2033_s21 }
  0xeb   : > { %v980_v42 = vpop.permute.xlu1 %979  ;;  %v1233_v11 = vsel %vm1221_vm9, %v1200_v51, %v1004_v26 }
  0xec   : > { %991 = vrot.lane.b32.xlu0 %v843_v10, %s2140_s22 }
  0xed   : > { %959 = vrot.lane.b32.xlu1 %v2617_v63, %s2136_s7 }
  0xee   : > { %v1036_v5 = vpop.permute.xlu0 %1035 }
  0xef   : > { %v1012_v59 = vpop.permute.xlu1 %1011  ;;  %v1266_v63 = vsel %vm1254_vm10, %v1233_v11, %v1036_v5 }
  0xf0   : > { %1055 = vrot.lane.b32.xlu0 %v2133_v0, %s2138_s9  ;;  %v1208_v0 = vsel %vm1188_vm8, %v1175_v39, %v980_v42  ;;  %s267_s9 = scalar_lea.vmem %s3024_s4, %s1987_s6 }
  0xf1   : > { %1023 = vrot.lane.b32.xlu1 %v2628_v37, %s2137_s8  ;;  %v1241_v40 = vsel %vm1221_vm9, %v1208_v0, %v1012_v59 }
  0xf2   : > { %v1068_v61 = vpop.permute.xlu0 %1067 }
  0xf3   : > { %v1304_v23 = vsel %vm1287_vm11, %v1266_v63, %v1068_v61  ;;  %v1044_v33 = vpop.permute.xlu1 %1043 }
  0xf4   : > { %1601 = vmatmul.mubr.bf16.gmra.mrb[20].mxu0 %v1304_v23  ;;  %v1274_v48 = vsel %vm1254_vm10, %v1241_v40, %v1044_v33 }
  0xf5   : > { %1087 = vrot.lane.b32.xlu1 %v2185_v1, %s2139_s14  ;;  %2020 = vmatprep.mubr.msk.bf16.mxu0 %vm1089_vm0, %v1381_v56 }
  0xf6   : > { %v878_v37 = vpop.permute.xlu0 %877 }
  0xf7   : > { %v1076_v49 = vpop.permute.xlu1 %1075  ;;  %v1103_v60 = vsel %vm1089_vm0, %v2411_v12, %v878_v37 }
  0xf8   : > { %v1316_v4 = vsel %vm1287_vm11, %v1274_v48, %v1076_v49 }
  0xf9   : > { %1633 = vmatmul.mubr.bf16.gmra.mrb[4].mxu1 %v1316_v4 }
  0xfa   : > { %v910_v2 = vpop.permute.xlu0 %909  ;;  %2024 = vmatprep.mubr.msk.bf16.mxu1 %vm1089_vm0, %v1389_v9 }
  0xfb   : > { %v886_v3 = vpop.permute.xlu1 %885  ;;  %v1136_v15 = vsel %vm1122_vm6, %v1103_v60, %v910_v2 }
  0xfc   : > { %v1111_v28 = vsel %vm1089_vm0, %v2423_v18, %v886_v3 }
  0xfe   : > { %v942_v38 = vpop.permute.xlu0 %941 }
  0xff   : > { %v918_v57 = vpop.permute.xlu1 %917  ;;  %v1169_v46 = vsel %vm1155_vm7, %v1136_v15, %v942_v38 }
 0x100   : > { %v1144_v12 = vsel %vm1122_vm6, %v1111_v28, %v918_v57 }
 0x102   : > { %v974_v44 = vpop.permute.xlu0 %973 }
 0x103   : > { %v950_v1 = vpop.permute.xlu1 %949  ;;  %v1202_v20 = vsel %vm1188_vm8, %v1169_v46, %v974_v44 }
 0x104   : > { %v1177_v50 = vsel %vm1155_vm7, %v1144_v12, %v950_v1 }
 0x106   : > { %v1006_v6 = vpop.permute.xlu0 %1005 }
 0x107   : > { %v982_v14 = vpop.permute.xlu1 %981  ;;  %v1235_v35 = vsel %vm1221_vm9, %v1202_v20, %v1006_v6 }
 0x108   : > { %v1210_v25 = vsel %vm1188_vm8, %v1177_v50, %v982_v14 }
 0x10a   : > { %v1038_v17 = vpop.permute.xlu0 %1037 }
 0x10b   : > { %v1014_v16 = vpop.permute.xlu1 %1013  ;;  %v1268_v31 = vsel %vm1254_vm10, %v1235_v35, %v1038_v17 }
 0x10c   : > { %v1243_v29 = vsel %vm1221_vm9, %v1210_v25, %v1014_v16 }
 0x10e   : > { %v1070_v36 = vpop.permute.xlu0 %1069 }
 0x10f   : > { %v1307_v32 = vsel %vm1287_vm11, %v1268_v31, %v1070_v36  ;;  %v1046_v43 = vpop.permute.xlu1 %1045 }
 0x110   : > { %1609 = vmatmul.mubr.bf16.gmra.mrb[24].mxu0 %v1307_v32  ;;  %v1276_v18 = vsel %vm1254_vm10, %v1243_v29, %v1046_v43 }
 0x111   : > { %2021 = vmatprep.mubr.msk.bf16.mxu0 %vm1089_vm0, %v1383_v7 }
 0x112   : > { %v880_v55 = vpop.permute.xlu0 %879 }
 0x113   : > { %v1078_v13 = vpop.permute.xlu1 %1077  ;;  %v1105_v24 = vsel %vm1089_vm0, %v2440_v21, %v880_v55 }
 0x114   : > { %v1319_v10 = vsel %vm1287_vm11, %v1276_v18, %v1078_v13  ;;  %v1397_v18 = vld [vmem:[#allocation2 + $0xe8] sm:$0xff] }
 0x115   : > { %1641 = vmatmul.mubr.bf16.gmra.mrb[8].mxu1 %v1319_v10 }
 0x116   : > { %v912_v41 = vpop.permute.xlu0 %911  ;;  %2025 = vmatprep.mubr.msk.bf16.mxu1 %vm1089_vm0, %v1391_v19 }
 0x117   : > { %v888_v52 = vpop.permute.xlu1 %887  ;;  %v1138_v58 = vsel %vm1122_vm6, %v1105_v24, %v912_v41 }
 0x118   : > { %v1113_v61 = vsel %vm1089_vm0, %v2470_v47, %v888_v52  ;;  %v1393_v47 = vld [vmem:[#allocation2 + $0xc8] sm:$0xff] }
 0x11a   : > { %v944_v62 = vpop.permute.xlu0 %943 }
 0x11b   : > { %v920_v54 = vpop.permute.xlu1 %919  ;;  %v1171_v51 = vsel %vm1155_vm7, %v1138_v58, %v944_v62 }
 0x11c   : > { %v1146_v23 = vsel %vm1122_vm6, %v1113_v61, %v920_v54 }
 0x11e   : > { %v976_v26 = vpop.permute.xlu0 %975 }
 0x11f   : > { %v952_v30 = vpop.permute.xlu1 %951  ;;  %v1204_v22 = vsel %vm1188_vm8, %v1171_v51, %v976_v26 }
 0x120   : > { %v1179_v39 = vsel %vm1155_vm7, %v1146_v23, %v952_v30 }
 0x122   : > { %v1008_v42 = vpop.permute.xlu0 %1007 }
 0x123   : > { %v984_v5 = vpop.permute.xlu1 %983  ;;  %v1237_v63 = vsel %vm1221_vm9, %v1204_v22, %v1008_v42 }
 0x124   : > { %v1212_v0 = vsel %vm1188_vm8, %v1179_v39, %v984_v5 }
 0x126   : > { %v1040_v59 = vpop.permute.xlu0 %1039 }
 0x127   : > { %v1016_v11 = vpop.permute.xlu1 %1015  ;;  %v1270_v56 = vsel %vm1254_vm10, %v1237_v63, %v1040_v59 }
 0x128   : > { %v1245_v40 = vsel %vm1221_vm9, %v1212_v0, %v1016_v11 }
 0x12a   : > { %v1072_v45 = vpop.permute.xlu0 %1071 }
 0x12b   : > { %v1310_v21 = vsel %vm1287_vm11, %v1270_v56, %v1072_v45  ;;  %v1048_v33 = vpop.permute.xlu1 %1047 }
 0x12c   : > { %1617 = vmatmul.mubr.bf16.gmra.mrb[28].mxu0 %v1310_v21  ;;  %v1278_v48 = vsel %vm1254_vm10, %v1245_v40, %v1048_v33 }
 0x12e   : > { %v890_v37 = vpop.permute.xlu0 %889 }
 0x12f   : > { %v1080_v49 = vpop.permute.xlu1 %1079  ;;  %v1115_v4 = vsel %vm1089_vm0, %v2500_v8, %v890_v37  ;;  %v1395_v8 = vld [vmem:[#allocation2 + $0xd8] sm:$0xff] }
 0x130   : > { %v1322_v9 = vsel %vm1287_vm11, %v1278_v48, %v1080_v49 }
 0x131   : > { %1649 = vmatmul.mubr.bf16.gmra.mrb[12].mxu1 %v1322_v9 }
 0x132   : > { %v954_v2 = vpop.permute.xlu0 %953  ;;  %2026 = vmatprep.mubr.msk.bf16.mxu1 %vm1089_vm0, %v1393_v47 }
 0x133   : > { %v922_v3 = vpop.permute.xlu1 %921 }
 0x134   : > { %v1148_v38 = vsel %vm1122_vm6, %v1115_v4, %v922_v3 }
 0x135   : > { %v1181_v44 = vsel %vm1155_vm7, %v1148_v38, %v954_v2 }
 0x136   : > { %v1018_v57 = vpop.permute.xlu0 %1017 }
 0x137   : > { %v986_v1 = vpop.permute.xlu1 %985 }
 0x138   : > { %v1214_v6 = vsel %vm1188_vm8, %v1181_v44, %v986_v1 }
 0x139   : > { %v1247_v14 = vsel %vm1221_vm9, %v1214_v6, %v1018_v57 }
 0x13a   : > { %v1082_v60 = vpop.permute.xlu0 %1081 }
 0x13b   : > { %v1050_v15 = vpop.permute.xlu1 %1049 }
 0x13c   : > { %v1280_v17 = vsel %vm1254_vm10, %v1247_v14, %v1050_v15 }
 0x13d   : > { %v1325_v46 = vsel %vm1287_vm11, %v1280_v17, %v1082_v60 }
 0x13e   : > { %v924_v16 = vpop.permute.xlu0 %923  ;;  %1657 = vmatmul.mubr.bf16.gmra.mrb[16].mxu1 %v1325_v46 }
 0x13f   : > { %v892_v20 = vpop.permute.xlu1 %891  ;;  %2027 = vmatprep.mubr.msk.bf16.mxu1 %vm1089_vm0, %v1395_v8 }
 0x140   : > { %v1117_v35 = vsel %vm1089_vm0, %v2516_v27, %v892_v20 }
 0x141   : > { %v1150_v31 = vsel %vm1122_vm6, %v1117_v35, %v924_v16 }
 0x142   : > { %v988_v28 = vpop.permute.xlu0 %987 }
 0x143   : > { %v956_v36 = vpop.permute.xlu1 %955 }
 0x144   : > { %v1183_v7 = vsel %vm1155_vm7, %v1150_v31, %v956_v36 }
 0x145   : > { %v1216_v32 = vsel %vm1188_vm8, %v1183_v7, %v988_v28 }
 0x146   : > { %v1052_v12 = vpop.permute.xlu0 %1051 }
 0x147   : > { %v1020_v43 = vpop.permute.xlu1 %1019 }
 0x148   : > { %v1249_v50 = vsel %vm1221_vm9, %v1216_v32, %v1020_v43 }
 0x149   : > { %v1282_v29 = vsel %vm1254_vm10, %v1249_v50, %v1052_v12 }
 0x14a   : > { %v894_v25 = vpop.permute.xlu0 %893 }
 0x14b   : > { %v1084_v55 = vpop.permute.xlu1 %1083  ;;  %v1119_v27 = vsel %vm1089_vm0, %v2548_v53, %v894_v25  ;;  %v1399_v53 = vld [vmem:[#allocation2 + $0xf8] sm:$0xff] }
 0x14c   : > { %v1328_v13 = vsel %vm1287_vm11, %v1282_v29, %v1084_v55 }
 0x14d   : > { %1665 = vmatmul.mubr.bf16.gmra.mrb[20].mxu1 %v1328_v13 }
 0x14e   : > { %v958_v19 = vpop.permute.xlu0 %957  ;;  %2028 = vmatprep.mubr.msk.bf16.mxu1 %vm1089_vm0, %v1397_v18 }
 0x14f   : > { %v926_v10 = vpop.permute.xlu1 %925 }
 0x150   : > { %v1152_v41 = vsel %vm1122_vm6, %v1119_v27, %v926_v10 }
 0x151   : > { %v1185_v62 = vsel %vm1155_vm7, %v1152_v41, %v958_v19 }
 0x152   : > { %v1022_v52 = vpop.permute.xlu0 %1021 }
 0x153   : > { %v990_v54 = vpop.permute.xlu1 %989 }
 0x154   : > { %v1218_v26 = vsel %vm1188_vm8, %v1185_v62, %v990_v54 }
 0x155   : > { %v1251_v42 = vsel %vm1221_vm9, %v1218_v26, %v1022_v52 }
 0x156   : > { %v1086_v30 = vpop.permute.xlu0 %1085 }
 0x157   : > { %v1054_v24 = vpop.permute.xlu1 %1053 }
 0x158   : > { %v1284_v5 = vsel %vm1254_vm10, %v1251_v42, %v1054_v24 }
 0x159   : > { %v1331_v58 = vsel %vm1287_vm11, %v1284_v5, %v1086_v30 }
 0x15a   : > { %v928_v59 = vpop.permute.xlu0 %927  ;;  %1673 = vmatmul.mubr.bf16.gmra.mrb[24].mxu1 %v1331_v58 }
 0x15b   : > { %v896_v51 = vpop.permute.xlu1 %895  ;;  %2029 = vmatprep.mubr.msk.bf16.mxu1 %vm1089_vm0, %v1399_v53 }
 0x15c   : > { %v1121_v11 = vsel %vm1089_vm0, %v2586_v34, %v896_v51  ;;  %v2923_v34 = vld [vmem:[%s3022_s2] ss:$0 sm:$0xff] }
 0x15d   : > { %v1154_v63 = vsel %vm1122_vm6, %v1121_v11, %v928_v59 }
 0x15e   : > { %v992_v22 = vpop.permute.xlu0 %991 }
 0x15f   : > { %v960_v61 = vpop.permute.xlu1 %959 }
 0x160   : > { %v1187_v56 = vsel %vm1155_vm7, %v1154_v63, %v960_v61 }
 0x161   : > { %v1220_v45 = vsel %vm1188_vm8, %v1187_v56, %v992_v22 }
 0x162   : > { %v1056_v33 = vpop.permute.xlu0 %1055 }
 0x163   : > { %v1024_v23 = vpop.permute.xlu1 %1023 }
 0x164   : > { %v1253_v21 = vsel %vm1221_vm9, %v1220_v45, %v1024_v23 }
 0x165   : > { %v1286_v39 = vsel %vm1254_vm10, %v1253_v21, %v1056_v33 }
 0x167   : > { %v1088_v0 = vpop.permute.xlu1 %1087 }
 0x168   : > { %v1334_v40 = vsel %vm1287_vm11, %v1286_v39, %v1088_v0 }
 0x169   : > { %1681 = vmatmul.mubr.bf16.gmra.mrb[28].mxu1 %v1334_v40 }
 0x173   : > { %v1562_v37 = vpop.f32.mrb[0].mxu0 }
 0x174   : > { %v1563_v48 = vadd.f32 %v2923_v34, %v1562_v37  ;;  %v1564_v49 = vpop.f32.mrb[1].mxu0 }
 0x175   : > { %v1565_v47 = vpop.f32.mrb[2].mxu0 }
 0x176   : > { %1689 = vst [vmem:[%s2928_s5] sm:$0xff] %v1563_v48  ;;  %v1566_v9 = vadd.f32 %v2923_v34, %v1565_v47  ;;  %v1567_v4 = vpop.f32.mrb[3].mxu0  ;;  %v1758_v2 = vmul.f32 %v1563_v48, %v1563_v48 }
 0x178   : > { %1690 = vst [vmem:[%s2928_s5 + $0x8] sm:$0xff] %v1566_v9  ;;  %v1721_v3 = vadd.f32 %v1566_v9, %v1563_v48  ;;  %v1759_v38 = vmul.f32 %v1566_v9, %v1566_v9 }
 0x17a   : > { %v1790_v57 = vadd.f32 %v1759_v38, %v1758_v2 }
 0x17b   : > { %v1570_v44 = vpop.f32.mrb[4].mxu0 }
 0x17c   : > { %v1571_v1 = vadd.f32 %v2923_v34, %v1570_v44  ;;  %v1572_v6 = vpop.f32.mrb[5].mxu0 }
 0x17d   : > { %v1573_v60 = vpop.f32.mrb[6].mxu0 }
 0x17e   : > { %1691 = vst [vmem:[%s2928_s5 + $0x10] sm:$0xff] %v1571_v1  ;;  %v1722_v14 = vadd.f32 %v1721_v3, %v1571_v1  ;;  %v1760_v15 = vmul.f32 %v1571_v1, %v1571_v1  ;;  %v1574_v17 = vadd.f32 %v2923_v34, %v1573_v60  ;;  %v1575_v8 = vpop.f32.mrb[7].mxu0 }
 0x180   : > { %v1791_v46 = vadd.f32 %v1790_v57, %v1760_v15  ;;  %1692 = vst [vmem:[%s2928_s5 + $0x18] sm:$0xff] %v1574_v17  ;;  %v1723_v16 = vadd.f32 %v1722_v14, %v1574_v17  ;;  %v1761_v20 = vmul.f32 %v1574_v17, %v1574_v17 }
 0x182   : > { %v1792_v35 = vadd.f32 %v1791_v46, %v1761_v20 }
 0x185   : > { %v1578_v28 = vpop.f32.mrb[8].mxu0 }
 0x186   : > { %v1579_v31 = vadd.f32 %v2923_v34, %v1578_v28  ;;  %v1580_v36 = vpop.f32.mrb[9].mxu0 }
 0x187   : > { %v1581_v7 = vpop.f32.mrb[10].mxu0 }
 0x188   : > { %1693 = vst [vmem:[%s2928_s5 + $0x20] sm:$0xff] %v1579_v31  ;;  %v1724_v12 = vadd.f32 %v1723_v16, %v1579_v31  ;;  %v1762_v32 = vmul.f32 %v1579_v31, %v1579_v31  ;;  %v1582_v43 = vadd.f32 %v2923_v34, %v1581_v7  ;;  %v1583_v50 = vpop.f32.mrb[11].mxu0 }
 0x18a   : > { %v1793_v25 = vadd.f32 %v1792_v35, %v1762_v32  ;;  %1694 = vst [vmem:[%s2928_s5 + $0x28] sm:$0xff] %v1582_v43  ;;  %v1725_v29 = vadd.f32 %v1724_v12, %v1582_v43  ;;  %v1763_v55 = vmul.f32 %v1582_v43, %v1582_v43 }
 0x18c   : > { %v1794_v18 = vadd.f32 %v1793_v25, %v1763_v55 }
 0x194   : > { %v1586_v13 = vpop.f32.mrb[12].mxu0 }
 0x195   : > { %v1587_v27 = vadd.f32 %v2923_v34, %v1586_v13  ;;  %v1588_v19 = vpop.f32.mrb[13].mxu0 }
 0x196   : > { %v1589_v10 = vpop.f32.mrb[14].mxu0 }
 0x197   : > { %1695 = vst [vmem:[%s2928_s5 + $0x30] sm:$0xff] %v1587_v27  ;;  %v1726_v41 = vadd.f32 %v1725_v29, %v1587_v27  ;;  %v1764_v52 = vmul.f32 %v1587_v27, %v1587_v27  ;;  %v1590_v62 = vadd.f32 %v2923_v34, %v1589_v10  ;;  %v1591_v54 = vpop.f32.mrb[15].mxu0 }
 0x199   : > { %v1795_v26 = vadd.f32 %v1794_v18, %v1764_v52  ;;  %1696 = vst [vmem:[%s2928_s5 + $0x38] sm:$0xff] %v1590_v62  ;;  %v1727_v30 = vadd.f32 %v1726_v41, %v1590_v62  ;;  %v1765_v42 = vmul.f32 %v1590_v62, %v1590_v62 }
 0x19b   : > { %v1796_v24 = vadd.f32 %v1795_v26, %v1765_v42 }
 0x1ab   : > { %v1594_v5 = vpop.f32.mrb[16].mxu0 }
 0x1ac   : > { %v1595_v53 = vadd.f32 %v2923_v34, %v1594_v5  ;;  %v1596_v58 = vpop.f32.mrb[17].mxu0 }
 0x1ad   : > { %v1597_v59 = vpop.f32.mrb[18].mxu0 }
 0x1ae   : > { %1697 = vst [vmem:[%s2928_s5 + $0x40] sm:$0xff] %v1595_v53  ;;  %v1728_v51 = vadd.f32 %v1727_v30, %v1595_v53  ;;  %v1766_v11 = vmul.f32 %v1595_v53, %v1595_v53  ;;  %v1598_v22 = vadd.f32 %v2923_v34, %v1597_v59  ;;  %v1599_v63 = vpop.f32.mrb[19].mxu0 }
 0x1b0   : > { %v1797_v61 = vadd.f32 %v1796_v24, %v1766_v11  ;;  %1698 = vst [vmem:[%s2928_s5 + $0x48] sm:$0xff] %v1598_v22  ;;  %v1729_v56 = vadd.f32 %v1728_v51, %v1598_v22  ;;  %v1767_v45 = vmul.f32 %v1598_v22, %v1598_v22  ;;  %v1626_v23 = vpop.f32.mrb[0].mxu1 }
 0x1b1   : > { %v2951_v21 = vadd.f32 %v2923_v34, %v1626_v23  ;;  %v1628_v33 = vpop.f32.mrb[1].mxu1 }
 0x1b2   : > { %v1798_v39 = vadd.f32 %v1797_v61, %v1767_v45  ;;  %v1629_v0 = vpop.f32.mrb[2].mxu1 }
 0x1b3   : > { %1705 = vst [vmem:[%s2928_s5 + $0x80] sm:$0xff] %v2951_v21  ;;  %v2956_v40 = vadd.f32 %v2923_v34, %v1629_v0  ;;  %v1631_v37 = vpop.f32.mrb[3].mxu1  ;;  %v1774_v11 = vmul.f32 %v2951_v21, %v2951_v21 }
 0x1b5   : > { %1706 = vst [vmem:[%s2928_s5 + $0x88] sm:$0xff] %v2956_v40  ;;  %v1775_v23 = vmul.f32 %v2956_v40, %v2956_v40 }
 0x1c7   : > { %v1602_v48 = vpop.f32.mrb[20].mxu0 }
 0x1c8   : > { %v1603_v49 = vadd.f32 %v2923_v34, %v1602_v48  ;;  %v1604_v47 = vpop.f32.mrb[21].mxu0 }
 0x1c9   : > { %v1605_v9 = vpop.f32.mrb[22].mxu0 }
 0x1ca   : > { %1699 = vst [vmem:[%s2928_s5 + $0x50] sm:$0xff] %v1603_v49  ;;  %v1730_v4 = vadd.f32 %v1729_v56, %v1603_v49  ;;  %v1768_v2 = vmul.f32 %v1603_v49, %v1603_v49  ;;  %v1606_v3 = vadd.f32 %v2923_v34, %v1605_v9  ;;  %v1607_v38 = vpop.f32.mrb[23].mxu0 }
 0x1cc   : > { %v1799_v57 = vadd.f32 %v1798_v39, %v1768_v2  ;;  %1700 = vst [vmem:[%s2928_s5 + $0x58] sm:$0xff] %v1606_v3  ;;  %v1731_v44 = vadd.f32 %v1730_v4, %v1606_v3  ;;  %v1769_v1 = vmul.f32 %v1606_v3, %v1606_v3  ;;  %v1634_v6 = vpop.f32.mrb[4].mxu1 }
 0x1cd   : > { %v1635_v60 = vadd.f32 %v2923_v34, %v1634_v6  ;;  %v1636_v14 = vpop.f32.mrb[5].mxu1 }
 0x1ce   : > { %v1800_v15 = vadd.f32 %v1799_v57, %v1769_v1  ;;  %v1637_v17 = vpop.f32.mrb[6].mxu1 }
 0x1cf   : > { %1707 = vst [vmem:[%s2928_s5 + $0x90] sm:$0xff] %v1635_v60  ;;  %v1638_v8 = vadd.f32 %v2923_v34, %v1637_v17  ;;  %v1639_v46 = vpop.f32.mrb[7].mxu1  ;;  %v1776_v0 = vmul.f32 %v1635_v60, %v1635_v60 }
 0x1d1   : > { %1708 = vst [vmem:[%s2928_s5 + $0x98] sm:$0xff] %v1638_v8  ;;  %v1777_v49 = vmul.f32 %v1638_v8, %v1638_v8 }
 0x1e3   : > { %v1610_v16 = vpop.f32.mrb[24].mxu0 }
 0x1e4   : > { %v1611_v20 = vadd.f32 %v2923_v34, %v1610_v16  ;;  %v1612_v35 = vpop.f32.mrb[25].mxu0 }
 0x1e5   : > { %v1613_v28 = vpop.f32.mrb[26].mxu0 }
 0x1e6   : > { %1701 = vst [vmem:[%s2928_s5 + $0x60] sm:$0xff] %v1611_v20  ;;  %v1732_v31 = vadd.f32 %v1731_v44, %v1611_v20  ;;  %v1770_v36 = vmul.f32 %v1611_v20, %v1611_v20  ;;  %v1614_v7 = vadd.f32 %v2923_v34, %v1613_v28  ;;  %v1615_v12 = vpop.f32.mrb[27].mxu0 }
 0x1e8   : > { %v1801_v32 = vadd.f32 %v1800_v15, %v1770_v36  ;;  %1702 = vst [vmem:[%s2928_s5 + $0x68] sm:$0xff] %v1614_v7  ;;  %v1733_v43 = vadd.f32 %v1732_v31, %v1614_v7  ;;  %v1771_v50 = vmul.f32 %v1614_v7, %v1614_v7  ;;  %v1642_v25 = vpop.f32.mrb[8].mxu1 }
 0x1e9   : > { %v1643_v29 = vadd.f32 %v2923_v34, %v1642_v25  ;;  %v1644_v55 = vpop.f32.mrb[9].mxu1 }
 0x1ea   : > { %v1802_v18 = vadd.f32 %v1801_v32, %v1771_v50  ;;  %v1645_v13 = vpop.f32.mrb[10].mxu1 }
 0x1eb   : > { %1709 = vst [vmem:[%s2928_s5 + $0xa0] sm:$0xff] %v1643_v29  ;;  %v1646_v27 = vadd.f32 %v2923_v34, %v1645_v13  ;;  %v1647_v19 = vpop.f32.mrb[11].mxu1 }
 0x1ed   : > { %1710 = vst [vmem:[%s2928_s5 + $0xa8] sm:$0xff] %v1646_v27  ;;  %v1779_v3 = vmul.f32 %v1646_v27, %v1646_v27 }
 0x1ff   : > { %v1618_v10 = vpop.f32.mrb[28].mxu0 }
 0x200   : > { %v1619_v41 = vadd.f32 %v2923_v34, %v1618_v10  ;;  %v1620_v52 = vpop.f32.mrb[29].mxu0 }
 0x201   : > { %v1621_v62 = vpop.f32.mrb[30].mxu0 }
 0x202   : > { %1703 = vst [vmem:[%s2928_s5 + $0x70] sm:$0xff] %v1619_v41  ;;  %v1734_v54 = vadd.f32 %v1733_v43, %v1619_v41  ;;  %v1772_v26 = vmul.f32 %v1619_v41, %v1619_v41  ;;  %v1622_v30 = vadd.f32 %v2923_v34, %v1621_v62  ;;  %v1623_v42 = vpop.f32.mrb[31].mxu0 }
 0x204   : > { %v1803_v24 = vadd.f32 %v1802_v18, %v1772_v26  ;;  %1704 = vst [vmem:[%s2928_s5 + $0x78] sm:$0xff] %v1622_v30  ;;  %v1735_v5 = vadd.f32 %v1734_v54, %v1622_v30  ;;  %v1773_v53 = vmul.f32 %v1622_v30, %v1622_v30  ;;  %v1650_v58 = vpop.f32.mrb[12].mxu1 }
 0x205   : > { %v1651_v59 = vadd.f32 %v2923_v34, %v1650_v58  ;;  %v1652_v51 = vpop.f32.mrb[13].mxu1 }
 0x206   : > { %v1736_v22 = vadd.f32 %v1735_v5, %v2951_v21  ;;  %v1804_v63 = vadd.f32 %v1803_v24, %v1773_v53  ;;  %v1653_v61 = vpop.f32.mrb[14].mxu1  ;;  %v1778_v21 = vmul.f32 %v1643_v29, %v1643_v29 }
 0x207   : > { %1711 = vst [vmem:[%s2928_s5 + $0xb0] sm:$0xff] %v1651_v59  ;;  %v1654_v56 = vadd.f32 %v2923_v34, %v1653_v61  ;;  %v1655_v45 = vpop.f32.mrb[15].mxu1  ;;  %v1780_v6 = vmul.f32 %v1651_v59, %v1651_v59 }
 0x208   : > { %v1737_v33 = vadd.f32 %v1736_v22, %v2956_v40  ;;  %v1805_v39 = vadd.f32 %v1804_v63, %v1774_v11 }
 0x209   : > { %1712 = vst [vmem:[%s2928_s5 + $0xb8] sm:$0xff] %v1654_v56  ;;  %v1781_v16 = vmul.f32 %v1654_v56, %v1654_v56 }
 0x20a   : > { %v1738_v37 = vadd.f32 %v1737_v33, %v1635_v60  ;;  %v1806_v48 = vadd.f32 %v1805_v39, %v1775_v23 }
 0x20c   : > { %v1807_v47 = vadd.f32 %v1806_v48, %v1776_v0  ;;  %v1739_v9 = vadd.f32 %v1738_v37, %v1638_v8 }
 0x20e   : > { %v1740_v4 = vadd.f32 %v1739_v9, %v1643_v29  ;;  %v1808_v2 = vadd.f32 %v1807_v47, %v1777_v49 }
 0x210   : > { %v1741_v38 = vadd.f32 %v1740_v4, %v1646_v27  ;;  %v1809_v57 = vadd.f32 %v1808_v2, %v1778_v21 }
 0x211   : > { %v1658_v44 = vpop.f32.mrb[16].mxu1 }
 0x212   : > { %v1742_v1 = vadd.f32 %v1741_v38, %v1651_v59  ;;  %v1810_v40 = vadd.f32 %v1809_v57, %v1779_v3  ;;  %v1659_v14 = vadd.f32 %v2923_v34, %v1658_v44  ;;  %v1660_v15 = vpop.f32.mrb[17].mxu1 }
 0x213   : > { %v1661_v60 = vpop.f32.mrb[18].mxu1 }
 0x214   : > { %v1811_v17 = vadd.f32 %v1810_v40, %v1780_v6  ;;  %v1743_v46 = vadd.f32 %v1742_v1, %v1654_v56  ;;  %1713 = vst [vmem:[%s2928_s5 + $0xc0] sm:$0xff] %v1659_v14  ;;  %v1662_v8 = vadd.f32 %v2923_v34, %v1661_v60  ;;  %v1663_v20 = vpop.f32.mrb[19].mxu1  ;;  %v1782_v31 = vmul.f32 %v1659_v14, %v1659_v14 }
 0x216   : > { %v1812_v35 = vadd.f32 %v1811_v17, %v1781_v16  ;;  %v1744_v28 = vadd.f32 %v1743_v46, %v1659_v14  ;;  %1714 = vst [vmem:[%s2928_s5 + $0xc8] sm:$0xff] %v1662_v8  ;;  %v1783_v12 = vmul.f32 %v1662_v8, %v1662_v8 }
 0x218   : > { %v1813_v36 = vadd.f32 %v1812_v35, %v1782_v31  ;;  %v1745_v7 = vadd.f32 %v1744_v28, %v1662_v8 }
 0x21a   : > { %v1814_v32 = vadd.f32 %v1813_v36, %v1783_v12 }
 0x220   : > { %v1666_v43 = vpop.f32.mrb[20].mxu1 }
 0x221   : > { %v1667_v50 = vadd.f32 %v2923_v34, %v1666_v43  ;;  %v1668_v25 = vpop.f32.mrb[21].mxu1 }
 0x222   : > { %v1669_v29 = vpop.f32.mrb[22].mxu1 }
 0x223   : > { %1715 = vst [vmem:[%s2928_s5 + $0xd0] sm:$0xff] %v1667_v50  ;;  %v1746_v55 = vadd.f32 %v1745_v7, %v1667_v50  ;;  %v1784_v18 = vmul.f32 %v1667_v50, %v1667_v50  ;;  %v1670_v13 = vadd.f32 %v2923_v34, %v1669_v29  ;;  %v1671_v27 = vpop.f32.mrb[23].mxu1 }
 0x225   : > { %v1815_v19 = vadd.f32 %v1814_v32, %v1784_v18  ;;  %1716 = vst [vmem:[%s2928_s5 + $0xd8] sm:$0xff] %v1670_v13  ;;  %v1747_v10 = vadd.f32 %v1746_v55, %v1670_v13  ;;  %v1785_v41 = vmul.f32 %v1670_v13, %v1670_v13 }
 0x227   : > { %v1816_v52 = vadd.f32 %v1815_v19, %v1785_v41 }
 0x22d   : > { %v1674_v62 = vpop.f32.mrb[24].mxu1 }
 0x22e   : > { %v1675_v54 = vadd.f32 %v2923_v34, %v1674_v62  ;;  %v1676_v26 = vpop.f32.mrb[25].mxu1 }
 0x22f   : > { %v1677_v30 = vpop.f32.mrb[26].mxu1 }
 0x230   : > { %1717 = vst [vmem:[%s2928_s5 + $0xe0] sm:$0xff] %v1675_v54  ;;  %v1748_v42 = vadd.f32 %v1747_v10, %v1675_v54  ;;  %v1786_v24 = vmul.f32 %v1675_v54, %v1675_v54  ;;  %v1678_v5 = vadd.f32 %v2923_v34, %v1677_v30  ;;  %v1679_v53 = vpop.f32.mrb[27].mxu1 }
 0x232   : > { %v1817_v58 = vadd.f32 %v1816_v52, %v1786_v24  ;;  %1718 = vst [vmem:[%s2928_s5 + $0xe8] sm:$0xff] %v1678_v5  ;;  %v1749_v59 = vadd.f32 %v1748_v42, %v1678_v5  ;;  %v1787_v51 = vmul.f32 %v1678_v5, %v1678_v5 }
 0x234   : > { %v1818_v11 = vadd.f32 %v1817_v58, %v1787_v51 }
 0x23c   : > { %v1682_v22 = vpop.f32.mrb[28].mxu1 }
 0x23d   : > { %v1683_v63 = vadd.f32 %v2923_v34, %v1682_v22  ;;  %v1684_v61 = vpop.f32.mrb[29].mxu1 }
 0x23e   : > { %v1685_v56 = vpop.f32.mrb[30].mxu1 }
 0x23f   : > { %1719 = vst [vmem:[%s2928_s5 + $0xf0] sm:$0xff] %v1683_v63  ;;  %v1750_v45 = vadd.f32 %v1749_v59, %v1683_v63  ;;  %v1788_v23 = vmul.f32 %v1683_v63, %v1683_v63  ;;  %v1686_v33 = vadd.f32 %v2923_v34, %v1685_v56  ;;  %v1687_v39 = vpop.f32.mrb[31].mxu1 }
 0x241   : > { %v1819_v0 = vadd.f32 %v1818_v11, %v1788_v23  ;;  %1720 = vst [vmem:[%s2928_s5 + $0xf8] sm:$0xff] %v1686_v33  ;;  %v1751_v37 = vadd.f32 %v1750_v45, %v1686_v33  ;;  %v1789_v48 = vmul.f32 %v1686_v33, %v1686_v33 }
 0x243   : > { %v1752_v49 = vrot.slane %v1751_v37, 4  ;;  %v1820_v47 = vadd.f32 %v1819_v0, %v1789_v48 }
 0x245   : > { %v1753_v9 = vadd.f32 %v1752_v49, %v1751_v37  ;;  %v1821_v21 = vrot.slane %v1820_v47, 4 }
 0x247   : > { %v1754_v4 = vrot.slane %v1753_v9, 2  ;;  %v1822_v2 = vadd.f32 %v1821_v21, %v1820_v47 }
 0x249   : > { %v1755_v3 = vadd.f32 %v1754_v4, %v1753_v9  ;;  %v1823_v38 = vrot.slane %v1822_v2, 2 }
 0x24b   : > { %v1756_v57 = vrot.slane %v1755_v3, 1  ;;  %v1824_v44 = vadd.f32 %v1823_v38, %v1822_v2 }
 0x24d   : > { %v1825_v1 = vrot.slane %v1824_v44, 1  ;;  %v1757_v34 = vadd.f32 %v1756_v57, %v1755_v3 }
 0x24f   : > { %v1826_v6 = vadd.f32 %v1825_v1, %v1824_v44 }
 0x251   : > { %v1828_v40 = vsel %vm529_vm2, %v1757_v34, %v1826_v6 }
 0x252   : > { %1829 = vst [vmem:[%s267_s9] sm:$0x3] %v1828_v40 }
 0x253 PF: > { %s15_s17 = sadd.s32 1, %s2131_s17   ;;  %s3027_s15 = smov %s2127_s16 }
 0x254   : > { %p12_p5 = scmp.ge.s32.totalorder %s15_s17, 4   ;;  %s3028_s16 = smov %s3030_s18 }
 0x256   :  { %14 = sbr.rel (!%p12_p5) target bundleno = 2 (0x2), region = 84 }

</bundles_post_ra>
